<compile_context>
chip_gen: v5e
topology: v5e:2x2
jax: 0.10.0
libtpu: 0.0.40
codegen_flags: <defaults>
</compile_context>

<pallas_src>
import functools

import jax
import jax.numpy as jnp
from jax.experimental import pallas as pl
from jax.experimental.pallas import tpu as pltpu


# ----------------------------- kernel ------------------------------------- #

def _softmax_lastdim(logits):
    m = jnp.max(logits, axis=-1, keepdims=True)
    e = jnp.exp(logits - m)
    s = jnp.sum(e, axis=-1, keepdims=True)
    # EUP reciprocal instead of a VALU divide.
    return e * pl.reciprocal(s, approx=True)


def extra_attention_kernel(
    x_a_ref, x_ref,
    # weights (stored (in, out)); head_w = [input_mask_l | output_mask_l] fused
    mw1_ref, mw2_ref, mw3_ref, head_w_ref,
    rw1_ref, rw2_ref, rw3_ref, rw4_ref,
    # all biases packed into one lane-aligned (1, TOTAL) f32 array
    bias_ref,
    # output
    o_ref,
    *, x_dim, bias_spec,
):
    def dense(h, w_ref, bias_idx):
        off, width = bias_spec[bias_idx]          # static python ints
        acc = jnp.dot(h.astype(w_ref.dtype), w_ref[...],
                      preferred_element_type=jnp.float32)
        return acc + bias_ref[:, off:off + width]

    x_a = x_a_ref[...]
    x = x_ref[...]

    # --- mask_layers: Linear->ReLU, Linear->(Dropout)->ReLU, Linear->(Dropout)->ReLU
    h = jnp.maximum(dense(x_a, mw1_ref, 0), 0.0)
    h = jnp.maximum(dense(h, mw2_ref, 1), 0.0)
    mask = jnp.maximum(dense(h, mw3_ref, 2), 0.0)

    # --- fused mask heads: one matmul, then split logits (static lane slices)
    head = dense(mask, head_w_ref, 3)             # (TILE_B, x_dim + 3)
    in_mask = _softmax_lastdim(head[:, :x_dim])
    out_mask = _softmax_lastdim(head[:, x_dim:x_dim + 3])
    weighted_x = in_mask * x

    # --- reg_layers: Linear->ReLU x3, Linear
    r = jnp.maximum(dense(weighted_x, rw1_ref, 4), 0.0)
    r = jnp.maximum(dense(r, rw2_ref, 5), 0.0)
    r = jnp.maximum(dense(r, rw3_ref, 6), 0.0)
    r = dense(r, rw4_ref, 7)

    # Output is 3 lanes wide (< 128) -> masked store; only 12 B/row, not worth widening.
    o_ref[...] = jnp.tanh(out_mask * r)


# ----------------------------- wrapper ------------------------------------ #

def _round_up(n, m):
    return ((n + m - 1) // m) * m


@functools.partial(jax.jit, static_argnames=("tile_b", "matmul_dtype"))
def extra_attention_forward(x_a, x, params, *, tile_b=128,
                            matmul_dtype=jnp.bfloat16):
    """params: dict of (in, out) f32 weights and (1, out) f32 biases."""
    B, x_a_dim = x_a.shape
    x_dim = x.shape[1]
    tile_b = min(tile_b, B)                       # full-array block if B < tile_b

    # Fuse the two softmax heads into one weight / bias.
    head_w = jnp.concatenate([params["iw"], params["ow"]], axis=1)   # (64, x_dim+3)
    head_b = jnp.concatenate([params["ib"], params["ob"]], axis=1)   # (1,  x_dim+3)

    weights = [params["mw1"], params["mw2"], params["mw3"], head_w,
               params["rw1"], params["rw2"], params["rw3"], params["rw4"]]
    weights = [w.astype(matmul_dtype) for w in weights]

    # Pack all biases into one lane-aligned (1, TOTAL) f32 array.
    biases = [params["mb1"], params["mb2"], params["mb3"], head_b,
              params["rb1"], params["rb2"], params["rb3"], params["rb4"]]
    offsets, cur = [], 0
    for b in biases:
        offsets.append(cur)
        cur += _round_up(b.shape[1], 128)         # keep every slice 128-lane aligned
    packed_bias = jnp.zeros((1, cur), jnp.float32)
    for off, b in zip(offsets, biases):
        packed_bias = packed_bias.at[:, off:off + b.shape[1]].set(
            b.astype(jnp.float32))
    bias_spec = tuple((off, b.shape[1]) for off, b in zip(offsets, biases))

    kernel = functools.partial(extra_attention_kernel,
                               x_dim=x_dim, bias_spec=bias_spec)

    def act_spec(d):                              # batch-tiled activations / output
        return pl.BlockSpec((tile_b, d), lambda i: (i, 0))

    def resident_spec(a):                         # weights: constant block index
        return pl.BlockSpec(a.shape, lambda i: (0, 0))

    grid = (pl.cdiv(B, tile_b),)
    return pl.pallas_call(
        kernel,
        out_shape=jax.ShapeDtypeStruct((B, 3), jnp.float32),
        grid=grid,
        in_specs=([act_spec(x_a_dim), act_spec(x_dim)]
                  + [resident_spec(w) for w in weights]
                  + [resident_spec(packed_bias)]),
        out_specs=act_spec(3),
        compiler_params=pltpu.CompilerParams(
            dimension_semantics=("parallel",)),
    )(x_a, x, *weights, packed_bias)


# -------------------------- deterministic init ----------------------------- #

def _kaiming_uniform(key, fan_in, fan_out):
    # PyTorch kaiming_uniform_(mode='fan_in', nonlinearity='relu'):
    # bound = sqrt(2) * sqrt(3 / fan_in) = sqrt(6 / fan_in).
    bound = (6.0 / fan_in) ** 0.5
    # stored as (in, out) so the kernel computes h @ W + b
    return jax.random.uniform(key, (fan_in, fan_out), jnp.float32, -bound, bound)


def init_params(key, x_a_dim, x_dim):
    names_shapes = [
        ("mw1", x_a_dim, 64), ("mw2", 64, 128), ("mw3", 128, 64),
        ("iw", 64, x_dim), ("ow", 64, 3),
        ("rw1", x_dim, 200), ("rw2", 200, 200), ("rw3", 200, 10), ("rw4", 10, 3),
    ]
    params = {}
    keys = jax.random.split(key, len(names_shapes))
    for k, (name, fin, fout) in zip(keys, names_shapes):
        params[name] = _kaiming_uniform(k, fin, fout)
        params[name.replace("w", "b", 1)] = jnp.zeros((1, fout), jnp.float32)
    return params


# ------------------------------- reference --------------------------------- #

def reference_forward(x_a, x, p, matmul_dtype=jnp.bfloat16):
    """Pure-JAX reference with the same bf16-at-dot / f32-accumulate convention."""
    def dense(h, w, b):
        return jnp.dot(h.astype(matmul_dtype), w.astype(matmul_dtype),
                       preferred_element_type=jnp.float32) + b

    def softmax(z):
        z = z - jnp.max(z, axis=-1, keepdims=True)
        e = jnp.exp(z)
        return e / jnp.sum(e, axis=-1, keepdims=True)

    h = jax.nn.relu(dense(x_a, p["mw1"], p["mb1"]))
    h = jax.nn.relu(dense(h, p["mw2"], p["mb2"]))
    mask = jax.nn.relu(dense(h, p["mw3"], p["mb3"]))
    in_mask = softmax(dense(mask, p["iw"], p["ib"]))
    weighted_x = in_mask * x
    out_mask = softmax(dense(mask, p["ow"], p["ob"]))
    r = jax.nn.relu(dense(weighted_x, p["rw1"], p["rb1"]))
    r = jax.nn.relu(dense(r, p["rw2"], p["rb2"]))
    r = jax.nn.relu(dense(r, p["rw3"], p["rb3"]))
    r = dense(r, p["rw4"], p["rb4"])
    return jnp.tanh(out_mask * r)


# --------------------------------- main ------------------------------------ #

if __name__ == "__main__":
    B, X_A_DIM, X_DIM = 256, 16, 32      # B multiple of TILE_B -> 2 grid steps
    TILE_B = 128

    key = jax.random.PRNGKey(0)
    k_xa, k_x, k_params = jax.random.split(key, 3)

    x_a = jax.random.normal(k_xa, (B, X_A_DIM), jnp.float32)
    x = jax.random.normal(k_x, (B, X_DIM), jnp.float32)
    params = init_params(k_params, X_A_DIM, X_DIM)

    out = extra_attention_forward(x_a, x, params, tile_b=TILE_B)
    out = jax.block_until_ready(out)

    ref = reference_forward(x_a, x, params)
    assert out.shape == (B, 3)
    # Tolerance covers the approx-reciprocal softmax and accumulation-order
    # differences; the reference uses the same bf16-at-dot convention.
    assert jnp.allclose(out, ref, atol=5e-3, rtol=5e-3), "mismatch vs reference"

    print("KERNEL_OK")
</pallas_src>

<mosaic_0001>
module attributes {stable_mosaic.version = 11 : i64} {
  func.func @extra_attention_kernel(%arg0: i32, %arg1: memref<128x16xf32, #tpu.memory_space<vmem>>, %arg2: memref<128x32xf32, #tpu.memory_space<vmem>>, %arg3: memref<16x64xbf16, #tpu.memory_space<vmem>>, %arg4: memref<64x128xbf16, #tpu.memory_space<vmem>>, %arg5: memref<128x64xbf16, #tpu.memory_space<vmem>>, %arg6: memref<64x35xbf16, #tpu.memory_space<vmem>>, %arg7: memref<32x200xbf16, #tpu.memory_space<vmem>>, %arg8: memref<200x200xbf16, #tpu.memory_space<vmem>>, %arg9: memref<200x10xbf16, #tpu.memory_space<vmem>>, %arg10: memref<10x3xbf16, #tpu.memory_space<vmem>>, %arg11: memref<1x1280xf32, #tpu.memory_space<vmem>>, %arg12: memref<128x3xf32, #tpu.memory_space<vmem>>) attributes {dimension_semantics = [#tpu.dimension_semantics<parallel>], iteration_bounds = array<i64: 2>, scalar_prefetch = 0 : i64, scratch_operands = 0 : i64, tpu.core_type = #tpu.core_type<tc>, window_params = [{transform_indices = @transform_0, window_bounds = array<i64: 128, 16>}, {transform_indices = @transform_1, window_bounds = array<i64: 128, 32>}, {pipeline_mode = #tpu.pipeline_mode<synchronous>, transform_indices = @transform_2, window_bounds = array<i64: 16, 64>}, {pipeline_mode = #tpu.pipeline_mode<synchronous>, transform_indices = @transform_3, window_bounds = array<i64: 64, 128>}, {pipeline_mode = #tpu.pipeline_mode<synchronous>, transform_indices = @transform_4, window_bounds = array<i64: 128, 64>}, {pipeline_mode = #tpu.pipeline_mode<synchronous>, transform_indices = @transform_5, window_bounds = array<i64: 64, 35>}, {pipeline_mode = #tpu.pipeline_mode<synchronous>, transform_indices = @transform_6, window_bounds = array<i64: 32, 200>}, {pipeline_mode = #tpu.pipeline_mode<synchronous>, transform_indices = @transform_7, window_bounds = array<i64: 200, 200>}, {pipeline_mode = #tpu.pipeline_mode<synchronous>, transform_indices = @transform_8, window_bounds = array<i64: 200, 10>}, {pipeline_mode = #tpu.pipeline_mode<synchronous>, transform_indices = @transform_9, window_bounds = array<i64: 10, 3>}, {pipeline_mode = #tpu.pipeline_mode<synchronous>, transform_indices = @transform_10, window_bounds = array<i64: 1, 1280>}, {transform_indices = @transform_11, window_bounds = array<i64: 128, 3>}]} {
    %c0 = arith.constant 0 : index
    %c0_0 = arith.constant 0 : index
    %0 = vector.load %arg1[%c0, %c0_0] : memref<128x16xf32, #tpu.memory_space<vmem>>, vector<128x16xf32>
    %c0_1 = arith.constant 0 : index
    %c0_2 = arith.constant 0 : index
    %1 = vector.load %arg2[%c0_1, %c0_2] : memref<128x32xf32, #tpu.memory_space<vmem>>, vector<128x32xf32>
    %2 = arith.truncf %0 : vector<128x16xf32> to vector<128x16xbf16>
    %c0_3 = arith.constant 0 : index
    %c0_4 = arith.constant 0 : index
    %3 = vector.load %arg3[%c0_3, %c0_4] : memref<16x64xbf16, #tpu.memory_space<vmem>>, vector<16x64xbf16>
    %cst = arith.constant dense<0.000000e+00> : vector<128x64xf32>
    %4 = tpu.matmul %2, %3, %cst {dimension_numbers = #tpu.dot_dimension_numbers<[1], [0], [0], [1], [0, 0, 1, 1], [], []>} : vector<128x16xbf16>, vector<16x64xbf16>, vector<128x64xf32> -> vector<128x64xf32>
    %c0_5 = arith.constant 0 : index
    %c0_6 = arith.constant 0 : index
    %5 = vector.load %arg11[%c0_5, %c0_6] : memref<1x1280xf32, #tpu.memory_space<vmem>>, vector<1x64xf32>
    %6 = vector.broadcast %5 : vector<1x64xf32> to vector<128x64xf32>
    %7 = arith.addf %4, %6 : vector<128x64xf32>
    %cst_7 = arith.constant 0.000000e+00 : f32
    %8 = vector.broadcast %cst_7 : f32 to vector<128x64xf32>
    %9 = arith.maximumf %7, %8 : vector<128x64xf32>
    %10 = arith.truncf %9 : vector<128x64xf32> to vector<128x64xbf16>
    %c0_8 = arith.constant 0 : index
    %c0_9 = arith.constant 0 : index
    %11 = vector.load %arg4[%c0_8, %c0_9] : memref<64x128xbf16, #tpu.memory_space<vmem>>, vector<64x128xbf16>
    %cst_10 = arith.constant dense<0.000000e+00> : vector<128x128xf32>
    %12 = tpu.matmul %10, %11, %cst_10 {dimension_numbers = #tpu.dot_dimension_numbers<[1], [0], [0], [1], [0, 0, 1, 1], [], []>} : vector<128x64xbf16>, vector<64x128xbf16>, vector<128x128xf32> -> vector<128x128xf32>
    %c0_11 = arith.constant 0 : index
    %c128 = arith.constant 128 : index
    %13 = vector.load %arg11[%c0_11, %c128] : memref<1x1280xf32, #tpu.memory_space<vmem>>, vector<1x128xf32>
    %14 = vector.broadcast %13 : vector<1x128xf32> to vector<128x128xf32>
    %15 = arith.addf %12, %14 : vector<128x128xf32>
    %cst_12 = arith.constant 0.000000e+00 : f32
    %16 = vector.broadcast %cst_12 : f32 to vector<128x128xf32>
    %17 = arith.maximumf %15, %16 : vector<128x128xf32>
    %18 = arith.truncf %17 : vector<128x128xf32> to vector<128x128xbf16>
    %c0_13 = arith.constant 0 : index
    %c0_14 = arith.constant 0 : index
    %19 = vector.load %arg5[%c0_13, %c0_14] : memref<128x64xbf16, #tpu.memory_space<vmem>>, vector<128x64xbf16>
    %cst_15 = arith.constant dense<0.000000e+00> : vector<128x64xf32>
    %20 = tpu.matmul %18, %19, %cst_15 {dimension_numbers = #tpu.dot_dimension_numbers<[1], [0], [0], [1], [0, 0, 1, 1], [], []>} : vector<128x128xbf16>, vector<128x64xbf16>, vector<128x64xf32> -> vector<128x64xf32>
    %c0_16 = arith.constant 0 : index
    %c256 = arith.constant 256 : index
    %21 = vector.load %arg11[%c0_16, %c256] : memref<1x1280xf32, #tpu.memory_space<vmem>>, vector<1x64xf32>
    %22 = vector.broadcast %21 : vector<1x64xf32> to vector<128x64xf32>
    %23 = arith.addf %20, %22 : vector<128x64xf32>
    %cst_17 = arith.constant 0.000000e+00 : f32
    %24 = vector.broadcast %cst_17 : f32 to vector<128x64xf32>
    %25 = arith.maximumf %23, %24 : vector<128x64xf32>
    %26 = arith.truncf %25 : vector<128x64xf32> to vector<128x64xbf16>
    %c0_18 = arith.constant 0 : index
    %c0_19 = arith.constant 0 : index
    %27 = vector.load %arg6[%c0_18, %c0_19] : memref<64x35xbf16, #tpu.memory_space<vmem>>, vector<64x35xbf16>
    %cst_20 = arith.constant dense<0.000000e+00> : vector<128x35xf32>
    %28 = tpu.matmul %26, %27, %cst_20 {dimension_numbers = #tpu.dot_dimension_numbers<[1], [0], [0], [1], [0, 0, 1, 1], [], []>} : vector<128x64xbf16>, vector<64x35xbf16>, vector<128x35xf32> -> vector<128x35xf32>
    %c0_21 = arith.constant 0 : index
    %c384 = arith.constant 384 : index
    %29 = vector.load %arg11[%c0_21, %c384] : memref<1x1280xf32, #tpu.memory_space<vmem>>, vector<1x35xf32>
    %30 = vector.broadcast %29 : vector<1x35xf32> to vector<128x35xf32>
    %31 = arith.addf %28, %30 : vector<128x35xf32>
    %32 = vector.extract_strided_slice %31 {offsets = [0, 0], sizes = [128, 32], strides = [1, 1]} : vector<128x35xf32> to vector<128x32xf32>
    %cst_22 = arith.constant dense<0xFF800000> : vector<128xf32>
    %33 = vector.multi_reduction <maximumf>, %32, %cst_22 [1] : vector<128x32xf32> to vector<128xf32>
    %34 = vector.shape_cast %33 : vector<128xf32> to vector<128x1xf32>
    %35 = vector.broadcast %34 : vector<128x1xf32> to vector<128x32xf32>
    %36 = arith.subf %32, %35 : vector<128x32xf32>
    %37 = math.exp %36 : vector<128x32xf32>
    %cst_23 = arith.constant dense<0.000000e+00> : vector<128xf32>
    %38 = vector.multi_reduction <add>, %37, %cst_23 [1] : vector<128x32xf32> to vector<128xf32>
    %39 = vector.shape_cast %38 : vector<128xf32> to vector<128x1xf32>
    %40 = tpu.reciprocal %39 {approx = true} : vector<128x1xf32> -> vector<128x1xf32>
    %41 = vector.broadcast %40 : vector<128x1xf32> to vector<128x32xf32>
    %42 = arith.mulf %37, %41 : vector<128x32xf32>
    %43 = vector.extract_strided_slice %31 {offsets = [0, 32], sizes = [128, 3], strides = [1, 1]} : vector<128x35xf32> to vector<128x3xf32>
    %cst_24 = arith.constant dense<0xFF800000> : vector<128xf32>
    %44 = vector.multi_reduction <maximumf>, %43, %cst_24 [1] : vector<128x3xf32> to vector<128xf32>
    %45 = vector.shape_cast %44 : vector<128xf32> to vector<128x1xf32>
    %46 = vector.broadcast %45 : vector<128x1xf32> to vector<128x3xf32>
    %47 = arith.subf %43, %46 : vector<128x3xf32>
    %48 = math.exp %47 : vector<128x3xf32>
    %cst_25 = arith.constant dense<0.000000e+00> : vector<128xf32>
    %49 = vector.multi_reduction <add>, %48, %cst_25 [1] : vector<128x3xf32> to vector<128xf32>
    %50 = vector.shape_cast %49 : vector<128xf32> to vector<128x1xf32>
    %51 = tpu.reciprocal %50 {approx = true} : vector<128x1xf32> -> vector<128x1xf32>
    %52 = vector.broadcast %51 : vector<128x1xf32> to vector<128x3xf32>
    %53 = arith.mulf %48, %52 : vector<128x3xf32>
    %54 = arith.mulf %42, %1 : vector<128x32xf32>
    %55 = arith.truncf %54 : vector<128x32xf32> to vector<128x32xbf16>
    %c0_26 = arith.constant 0 : index
    %c0_27 = arith.constant 0 : index
    %56 = vector.load %arg7[%c0_26, %c0_27] : memref<32x200xbf16, #tpu.memory_space<vmem>>, vector<32x200xbf16>
    %cst_28 = arith.constant dense<0.000000e+00> : vector<128x200xf32>
    %57 = tpu.matmul %55, %56, %cst_28 {dimension_numbers = #tpu.dot_dimension_numbers<[1], [0], [0], [1], [0, 0, 1, 1], [], []>} : vector<128x32xbf16>, vector<32x200xbf16>, vector<128x200xf32> -> vector<128x200xf32>
    %c0_29 = arith.constant 0 : index
    %c512 = arith.constant 512 : index
    %58 = vector.load %arg11[%c0_29, %c512] : memref<1x1280xf32, #tpu.memory_space<vmem>>, vector<1x200xf32>
    %59 = vector.broadcast %58 : vector<1x200xf32> to vector<128x200xf32>
    %60 = arith.addf %57, %59 : vector<128x200xf32>
    %cst_30 = arith.constant 0.000000e+00 : f32
    %61 = vector.broadcast %cst_30 : f32 to vector<128x200xf32>
    %62 = arith.maximumf %60, %61 : vector<128x200xf32>
    %63 = arith.truncf %62 : vector<128x200xf32> to vector<128x200xbf16>
    %c0_31 = arith.constant 0 : index
    %c0_32 = arith.constant 0 : index
    %64 = vector.load %arg8[%c0_31, %c0_32] : memref<200x200xbf16, #tpu.memory_space<vmem>>, vector<200x200xbf16>
    %cst_33 = arith.constant dense<0.000000e+00> : vector<128x200xf32>
    %65 = tpu.matmul %63, %64, %cst_33 {dimension_numbers = #tpu.dot_dimension_numbers<[1], [0], [0], [1], [0, 0, 1, 1], [], []>} : vector<128x200xbf16>, vector<200x200xbf16>, vector<128x200xf32> -> vector<128x200xf32>
    %c0_34 = arith.constant 0 : index
    %c768 = arith.constant 768 : index
    %66 = vector.load %arg11[%c0_34, %c768] : memref<1x1280xf32, #tpu.memory_space<vmem>>, vector<1x200xf32>
    %67 = vector.broadcast %66 : vector<1x200xf32> to vector<128x200xf32>
    %68 = arith.addf %65, %67 : vector<128x200xf32>
    %cst_35 = arith.constant 0.000000e+00 : f32
    %69 = vector.broadcast %cst_35 : f32 to vector<128x200xf32>
    %70 = arith.maximumf %68, %69 : vector<128x200xf32>
    %71 = arith.truncf %70 : vector<128x200xf32> to vector<128x200xbf16>
    %c0_36 = arith.constant 0 : index
    %c0_37 = arith.constant 0 : index
    %72 = vector.load %arg9[%c0_36, %c0_37] : memref<200x10xbf16, #tpu.memory_space<vmem>>, vector<200x10xbf16>
    %cst_38 = arith.constant dense<0.000000e+00> : vector<128x10xf32>
    %73 = tpu.matmul %71, %72, %cst_38 {dimension_numbers = #tpu.dot_dimension_numbers<[1], [0], [0], [1], [0, 0, 1, 1], [], []>} : vector<128x200xbf16>, vector<200x10xbf16>, vector<128x10xf32> -> vector<128x10xf32>
    %c0_39 = arith.constant 0 : index
    %c1024 = arith.constant 1024 : index
    %74 = vector.load %arg11[%c0_39, %c1024] : memref<1x1280xf32, #tpu.memory_space<vmem>>, vector<1x10xf32>
    %75 = vector.broadcast %74 : vector<1x10xf32> to vector<128x10xf32>
    %76 = arith.addf %73, %75 : vector<128x10xf32>
    %cst_40 = arith.constant 0.000000e+00 : f32
    %77 = vector.broadcast %cst_40 : f32 to vector<128x10xf32>
    %78 = arith.maximumf %76, %77 : vector<128x10xf32>
    %79 = arith.truncf %78 : vector<128x10xf32> to vector<128x10xbf16>
    %c0_41 = arith.constant 0 : index
    %c0_42 = arith.constant 0 : index
    %80 = vector.load %arg10[%c0_41, %c0_42] : memref<10x3xbf16, #tpu.memory_space<vmem>>, vector<10x3xbf16>
    %cst_43 = arith.constant dense<0.000000e+00> : vector<128x3xf32>
    %81 = tpu.matmul %79, %80, %cst_43 {dimension_numbers = #tpu.dot_dimension_numbers<[1], [0], [0], [1], [0, 0, 1, 1], [], []>} : vector<128x10xbf16>, vector<10x3xbf16>, vector<128x3xf32> -> vector<128x3xf32>
    %c0_44 = arith.constant 0 : index
    %c1152 = arith.constant 1152 : index
    %82 = vector.load %arg11[%c0_44, %c1152] : memref<1x1280xf32, #tpu.memory_space<vmem>>, vector<1x3xf32>
    %83 = vector.broadcast %82 : vector<1x3xf32> to vector<128x3xf32>
    %84 = arith.addf %81, %83 : vector<128x3xf32>
    %85 = arith.mulf %53, %84 : vector<128x3xf32>
    %86 = math.tanh %85 : vector<128x3xf32>
    %c0_45 = arith.constant 0 : index
    %c0_46 = arith.constant 0 : index
    %87 = vector.load %arg12[%c0_45, %c0_46] : memref<128x3xf32, #tpu.memory_space<vmem>>, vector<128x3xf32>
    tpu.vector_store %arg12[%c0_45, %c0_46], %86 {strides = array<i32>} : memref<128x3xf32, #tpu.memory_space<vmem>>, vector<128x3xf32>,
    return
  }
  func.func @transform_0(%arg0: i32) -> (i32, i32) {
    %c0_i32 = arith.constant 0 : i32
    %c0_i32_0 = arith.constant 0 : i32
    return %arg0, %c0_i32 : i32, i32
  }
  func.func @transform_1(%arg0: i32) -> (i32, i32) {
    %c0_i32 = arith.constant 0 : i32
    %c0_i32_0 = arith.constant 0 : i32
    return %arg0, %c0_i32 : i32, i32
  }
  func.func @transform_2(%arg0: i32) -> (i32, i32) {
    %c0_i32 = arith.constant 0 : i32
    %c0_i32_0 = arith.constant 0 : i32
    %c0_i32_1 = arith.constant 0 : i32
    return %c0_i32, %c0_i32_0 : i32, i32
  }
  func.func @transform_3(%arg0: i32) -> (i32, i32) {
    %c0_i32 = arith.constant 0 : i32
    %c0_i32_0 = arith.constant 0 : i32
    %c0_i32_1 = arith.constant 0 : i32
    return %c0_i32, %c0_i32_0 : i32, i32
  }
  func.func @transform_4(%arg0: i32) -> (i32, i32) {
    %c0_i32 = arith.constant 0 : i32
    %c0_i32_0 = arith.constant 0 : i32
    %c0_i32_1 = arith.constant 0 : i32
    return %c0_i32, %c0_i32_0 : i32, i32
  }
  func.func @transform_5(%arg0: i32) -> (i32, i32) {
    %c0_i32 = arith.constant 0 : i32
    %c0_i32_0 = arith.constant 0 : i32
    %c0_i32_1 = arith.constant 0 : i32
    return %c0_i32, %c0_i32_0 : i32, i32
  }
  func.func @transform_6(%arg0: i32) -> (i32, i32) {
    %c0_i32 = arith.constant 0 : i32
    %c0_i32_0 = arith.constant 0 : i32
    %c0_i32_1 = arith.constant 0 : i32
    return %c0_i32, %c0_i32_0 : i32, i32
  }
  func.func @transform_7(%arg0: i32) -> (i32, i32) {
    %c0_i32 = arith.constant 0 : i32
    %c0_i32_0 = arith.constant 0 : i32
    %c0_i32_1 = arith.constant 0 : i32
    return %c0_i32, %c0_i32_0 : i32, i32
  }
  func.func @transform_8(%arg0: i32) -> (i32, i32) {
    %c0_i32 = arith.constant 0 : i32
    %c0_i32_0 = arith.constant 0 : i32
    %c0_i32_1 = arith.constant 0 : i32
    return %c0_i32, %c0_i32_0 : i32, i32
  }
  func.func @transform_9(%arg0: i32) -> (i32, i32) {
    %c0_i32 = arith.constant 0 : i32
    %c0_i32_0 = arith.constant 0 : i32
    %c0_i32_1 = arith.constant 0 : i32
    return %c0_i32, %c0_i32_0 : i32, i32
  }
  func.func @transform_10(%arg0: i32) -> (i32, i32) {
    %c0_i32 = arith.constant 0 : i32
    %c0_i32_0 = arith.constant 0 : i32
    %c0_i32_1 = arith.constant 0 : i32
    return %c0_i32, %c0_i32_0 : i32, i32
  }
  func.func @transform_11(%arg0: i32) -> (i32, i32) {
    %c0_i32 = arith.constant 0 : i32
    %c0_i32_0 = arith.constant 0 : i32
    return %arg0, %c0_i32 : i32, i32
  }
}

</mosaic_0001>

<bundles_post_ra>
// kernel: extra_attention_forward.1
= control target key start
LH: loop header
LB: loop body
LE: loop exit
PB: predicated region body
PF: predicated region fallthrough
CT: control target
= control target key end

     0   :  { %s3232_s17 = smov 0   ;;  %s4259_s0 = inlined_call_operand.vmem [shape: f32[256,16], index: 0, kind: input, shape index: {}]   ;;  %s4260_s1 = inlined_call_operand.vmem [shape: f32[256,32], index: 1, kind: input, shape index: {}]   ;;  %s4261_s2 = inlined_call_operand.vmem [shape: bf16[16,64], index: 2, kind: input, shape index: {}]   ;;  %s4262_s3 = inlined_call_operand.vmem [shape: bf16[64,128], index: 3, kind: input, shape index: {}]   ;;  %s4263_s4 = inlined_call_operand.vmem [shape: bf16[128,64], index: 4, kind: input, shape index: {}]   ;;  %s4264_s5 = inlined_call_operand.vmem [shape: bf16[64,35], index: 5, kind: input, shape index: {}]   ;;  %s4265_s6 = inlined_call_operand.vmem [shape: bf16[32,200], index: 6, kind: input, shape index: {}]   ;;  %s4266_s7 = inlined_call_operand.vmem [shape: bf16[200,200], index: 7, kind: input, shape index: {}]   ;;  %s4267_s8 = inlined_call_operand.vmem [shape: bf16[200,10], index: 8, kind: input, shape index: {}]   ;;  %s4268_s9 = inlined_call_operand.vmem [shape: bf16[10,3], index: 9, kind: input, shape index: {}]   ;;  %s4269_s10 = inlined_call_operand.vmem [shape: f32[1,1280], index: 10, kind: input, shape index: {}]   ;;  %s4270_s11 = inlined_call_operand.vmem [shape: f32[256,3], index: 11, kind: output, shape index: {}]  }
   0x1 LB: > { %s2608_s18 = sadd.s32 4294967295, %s3168_s17   ;;  %p2612_p0 = scmp.ge.s32.totalorder %s3168_s17, 1  ;;  %s3168_s17 = sphi %s3232_s17, %s21_s17  }
   0x2   : > { %p349_p1 = scmp.lt.s32.totalorder %s3168_s17, 3 }
   0x4   : > { %p350_p2 = pnand %p2612_p0, %p349_p1 }
   0x5   : > { %s2613_s21 = sshll.u32 (!%p350_p2), %s2608_s18, 4  ;;  %s3170_s20 = smov (!%p350_p2), 96  }
   0x6   : > { %353 = sbr.rel (%p350_p2) target bundleno = 1832 (0x728), region = 64  ;;  %p395_p3 = scmp.lt.s32.totalorder (!%p350_p2), %s2613_s21, 31 }
   0x7   : > { %s3171_s24 = smov (!%p350_p2), 32  }
   0xb   : > { %v2925_v0 = vld [vmem:[%s4261_s2] sm:$0xff]  ;;  %v2929_v1 = vld [vmem:[%s4262_s3 + $0x18] sm:$0xff]  ;;  %s4272_s21 = smov (!%p395_p3, %s2613_s21), 31  ;;  %v2928_v2 = vld [vmem:[%s4262_s3 + $0x10] sm:$0xff]  ;;  %vm465_vm0 = vcmask 130048   ;;  %vm599_vm1 = vcmask 523264  }
   0xc   : > { %497 = vmatpush.bf16.msra.mxu0 %v2925_v0  ;;  %2983 = vmatpush.bf16.msra.mxu1 %v2925_v0  ;;  %s3249_s26 = sshll.u32 %s4272_s21, 3  ;;  %v2927_v8 = vld [vmem:[%s4262_s3 + $0x8] sm:$0xff]  ;;  %v2926_v25 = vld [vmem:[%s4262_s3] sm:$0xff]  ;;  %v2937_v52 = vld [vmem:[%s4263_s4 + $0x38] sm:$0xff]  ;;  %vm947_vm2 = vcmask 261120   ;;  %vm1124_vm3 = vcmask 285952  }
   0xd   : > { %2984 = vmatpush.bf16.msra.mxu2 %v2925_v0  ;;  %2985 = vmatpush.bf16.msra.mxu3 %v2925_v0  ;;  %s3255_s29 = scalar_lea.vmem %s4259_s0, %s3249_s26  ;;  %v3290_v30 = vld [vmem:[%s4269_s10] ss:$0 sm:$0xff]  ;;  %v2936_v61 = vld [vmem:[%s4263_s4 + $0x30] sm:$0xff]  ;;  %v2935_v62 = vld [vmem:[%s4263_s4 + $0x28] sm:$0xff]  ;;  %s3543_s14 = scalar_lea.vmem %s4260_s1, %s3249_s26  ;;  %vm1771_vm4 = vcmask 1043456   ;;  %vm1746_vm5 = vcmask 588800  }
   0xe   : > { %v413_v3 = vld [vmem:[%s3255_s29] sm:$0xff]  ;;  %v414_v4 = vld [vmem:[%s3255_s29 + $0x8] sm:$0xff]  ;;  %v415_v16 = vld [vmem:[%s3255_s29 + $0x10] sm:$0xff]  ;;  %vm1285_vm6 = vcmask 23552   ;;  %vm2311_vm7 = vcmask 1044480   ;;  %vm2286_vm8 = vcmask 80896   ;;  %s4214_s28 = scalar_lea.vmem %s4270_s11, %s3249_s26 }
   0xf   : > { %v445_v5 = vpack.c.bf16 %v414_v4, %v413_v3  ;;  %v417_v6 = vld [vmem:[%s3255_s29 + $0x20] sm:$0xff]  ;;  %v418_v7 = vld [vmem:[%s3255_s29 + $0x28] sm:$0xff]  ;;  %v416_v17 = vld [vmem:[%s3255_s29 + $0x18] sm:$0xff] }
  0x10   : > { %628 = vmatpush.bf16.msrb.mxu1 %v2929_v1  ;;  %v447_v9 = vpack.c.bf16 %v418_v7, %v417_v6  ;;  %v421_v10 = vld [vmem:[%s3255_s29 + $0x40] sm:$0xff]  ;;  %v422_v11 = vld [vmem:[%s3255_s29 + $0x48] sm:$0xff]  ;;  %v419_v18 = vld [vmem:[%s3255_s29 + $0x30] sm:$0xff]  ;;  %v446_v20 = vpack.c.bf16 %v416_v17, %v415_v16 }
  0x11   : > { %2623 = vmatmul.msk.bf16.vlgmr.msra.gmra.mxu0 %vm465_vm0, %v445_v5  ;;  %v449_v12 = vpack.c.bf16 %v422_v11, %v421_v10  ;;  %v425_v13 = vld [vmem:[%s3255_s29 + $0x60] sm:$0xff]  ;;  %v426_v14 = vld [vmem:[%s3255_s29 + $0x68] sm:$0xff]  ;;  %v420_v19 = vld [vmem:[%s3255_s29 + $0x38] sm:$0xff]  ;;  %765 = vmatpush.bf16.msrb.mxu2 %v2937_v52 }
  0x12   : > { %2625 = vmatmul.msk.bf16.vlgmr.msra.gmra.mxu1 %vm465_vm0, %v447_v9  ;;  %v451_v15 = vpack.c.bf16 %v426_v14, %v425_v13  ;;  %v423_v21 = vld [vmem:[%s3255_s29 + $0x50] sm:$0xff]  ;;  %v424_v22 = vld [vmem:[%s3255_s29 + $0x58] sm:$0xff]  ;;  %v448_v23 = vpack.c.bf16 %v420_v19, %v419_v18  ;;  %v2934_v1 = vld [vmem:[%s4263_s4 + $0x20] sm:$0xff] }
  0x13   : > { %2627 = vmatmul.msk.bf16.vlgmr.msra.gmra.mxu2 %vm465_vm0, %v449_v12  ;;  %v450_v24 = vpack.c.bf16 %v424_v22, %v423_v21  ;;  %v427_v26 = vld [vmem:[%s3255_s29 + $0x70] sm:$0xff]  ;;  %v428_v27 = vld [vmem:[%s3255_s29 + $0x78] sm:$0xff]  ;;  %v2931_v22 = vld [vmem:[%s4263_s4 + $0x8] sm:$0xff] }
  0x14   : > { %629 = vmatpush.bf16.msrb.mxu1 %v2928_v2  ;;  %2629 = vmatmul.msk.bf16.vlgmr.msra.gmra.mxu3 %vm465_vm0, %v451_v15  ;;  %v452_v28 = vpack.c.bf16 %v428_v27, %v427_v26  ;;  %v2933_v5 = vld [vmem:[%s4263_s4 + $0x18] sm:$0xff] }
  0x15   : > { %766 = vmatpush.bf16.msrb.mxu2 %v2936_v61 }
  0x18   : > { %630 = vmatpush.bf16.msrb.mxu1 %v2927_v8 }
  0x19   : > { %767 = vmatpush.bf16.msrb.mxu2 %v2935_v62 }
  0x1c   : > { %631 = vmatpush.bf16.msrb.mxu1 %v2926_v25 }
  0x1d   : > { %768 = vmatpush.bf16.msrb.mxu2 %v2934_v1 }
  0x21   : > { %2624 = vmatmul.msk.bf16.gmra.mxu0 %vm465_vm0, %v446_v20  ;;  %769 = vmatpush.bf16.msrb.mxu2 %v2933_v5  ;;  %v2932_v20 = vld [vmem:[%s4263_s4 + $0x10] sm:$0xff]  ;;  %v2939_v5 = vld [vmem:[%s4264_s5 + $0x8] sm:$0xff] }
  0x22   : > { %2626 = vmatmul.msk.bf16.gmra.mxu1 %vm465_vm0, %v448_v23 }
  0x23   : > { %2628 = vmatmul.msk.bf16.gmra.mxu2 %vm465_vm0, %v450_v24  ;;  %v2930_v24 = vld [vmem:[%s4263_s4] sm:$0xff] }
  0x24   : > { %2630 = vmatmul.msk.bf16.gmra.mxu3 %vm465_vm0, %v452_v28 }
  0x25   : > { %770 = vmatpush.bf16.msrb.mxu2 %v2932_v20 }
  0x29   : > { %771 = vmatpush.bf16.msrb.mxu2 %v2931_v22 }
  0x2d   : > { %772 = vmatpush.bf16.msrb.mxu2 %v2930_v24 }
  0x8e   : > { %v499_v29 = vpop.f32.mrf.mxu0 }
  0x8f   : > { %v500_v31 = vadd.f32 %v3290_v30, %v499_v29  ;;  %v509_v38 = vpop.f32.mrf.mxu1 }
  0x90   : > { %v510_v46 = vadd.f32 %v3290_v30, %v509_v38 }
  0x91   : > { %v539_v34 = vmax.f32 %v500_v31, 0.0 }
  0x92   : > { %v543_v49 = vmax.f32 %v510_v46, 0.0 }
  0x96   : > { %v501_v32 = vpop.f32.mrf.mxu0  ;;  %v519_v54 = vpop.f32.mrf.mxu2 }
  0x97   : > { %v502_v33 = vadd.f32 %v3290_v30, %v501_v32  ;;  %v511_v45 = vpop.f32.mrf.mxu1  ;;  %v520_v63 = vadd.f32 %v3290_v30, %v519_v54  ;;  %v529_v12 = vpop.f32.mrf.mxu3  ;;  %v3343_v32 = vld [vmem:[%s4269_s10 + $0x1] ss:$0 sm:$0xff] }
  0x98   : > { %v512_v47 = vadd.f32 %v3290_v30, %v511_v45  ;;  %v530_v15 = vadd.f32 %v3290_v30, %v529_v12 }
  0x99   : > { %v540_v35 = vmax.f32 %v502_v33, 0.0  ;;  %v547_v3 = vmax.f32 %v520_v63, 0.0 }
  0x9a   : > { %v544_v50 = vmax.f32 %v512_v47, 0.0  ;;  %v551_v17 = vmax.f32 %v530_v15, 0.0 }
  0x9b   : > { %v555_v36 = vpack.c.bf16 %v540_v35, %v539_v34 }
  0x9c   : > { %v557_v51 = vpack.c.bf16 %v544_v50, %v543_v49 }
  0x9d   : > { %2647 = vmatmul.msk.bf16.vlgmr.msrb.gmra.mxu1 %vm599_vm1, %v555_v36 }
  0x9e   : > { %v504_v37 = vpop.f32.mrf.mxu0  ;;  %v521_v60 = vpop.f32.mrf.mxu2 }
  0x9f   : > { %v505_v39 = vadd.f32 %v3290_v30, %v504_v37  ;;  %v514_v48 = vpop.f32.mrf.mxu1  ;;  %v522_v0 = vadd.f32 %v3290_v30, %v521_v60  ;;  %v531_v14 = vpop.f32.mrf.mxu3  ;;  %v2941_v60 = vld [vmem:[%s4264_s5 + $0x18] sm:$0xff] }
  0xa0   : > { %v515_v55 = vadd.f32 %v3290_v30, %v514_v48  ;;  %v532_v16 = vadd.f32 %v3290_v30, %v531_v14  ;;  %902 = vmatpush.bf16.msrb.mxu3 %v2941_v60 }
  0xa1   : > { %v541_v42 = vmax.f32 %v505_v39, 0.0  ;;  %v548_v4 = vmax.f32 %v522_v0, 0.0 }
  0xa2   : > { %v545_v57 = vmax.f32 %v515_v55, 0.0  ;;  %v552_v18 = vmax.f32 %v532_v16, 0.0 }
  0xa3   : > { %v559_v6 = vpack.c.bf16 %v548_v4, %v547_v3 }
  0xa4   : > { %v561_v19 = vpack.c.bf16 %v552_v18, %v551_v17 }
  0xa6   : > { %v506_v40 = vpop.f32.mrf.mxu0  ;;  %v524_v2 = vpop.f32.mrf.mxu2 }
  0xa7   : > { %v507_v41 = vadd.f32 %v3290_v30, %v506_v40  ;;  %v516_v53 = vpop.f32.mrf.mxu1  ;;  %v525_v8 = vadd.f32 %v3290_v30, %v524_v2  ;;  %v534_v21 = vpop.f32.mrf.mxu3  ;;  %v2940_v2 = vld [vmem:[%s4264_s5 + $0x10] sm:$0xff] }
  0xa8   : > { %v517_v56 = vadd.f32 %v3290_v30, %v516_v53  ;;  %v535_v23 = vadd.f32 %v3290_v30, %v534_v21  ;;  %903 = vmatpush.bf16.msrb.mxu3 %v2940_v2  ;;  %v2938_v21 = vld [vmem:[%s4264_s5] sm:$0xff] }
  0xa9   : > { %v542_v43 = vmax.f32 %v507_v41, 0.0  ;;  %v549_v10 = vmax.f32 %v525_v8, 0.0 }
  0xaa   : > { %v546_v58 = vmax.f32 %v517_v56, 0.0  ;;  %v553_v26 = vmax.f32 %v535_v23, 0.0 }
  0xab   : > { %v556_v44 = vpack.c.bf16 %v542_v43, %v541_v42 }
  0xac   : > { %v558_v59 = vpack.c.bf16 %v546_v58, %v545_v57  ;;  %904 = vmatpush.bf16.msrb.mxu3 %v2939_v5 }
  0xad   : > { %2648 = vmatmul.msk.bf16.gmra.mxu1 %vm599_vm1, %v556_v44 }
  0xae   : > { %v526_v7 = vpop.f32.mrf.mxu2 }
  0xaf   : > { %v527_v9 = vadd.f32 %v3290_v30, %v526_v7  ;;  %v536_v25 = vpop.f32.mrf.mxu3 }
  0xb0   : > { %v537_v27 = vadd.f32 %v3290_v30, %v536_v25  ;;  %905 = vmatpush.bf16.msrb.mxu3 %v2938_v21 }
  0xb1   : > { %v550_v11 = vmax.f32 %v527_v9, 0.0 }
  0xb2   : > { %v554_v28 = vmax.f32 %v537_v27, 0.0 }
  0xb3   : > { %v560_v13 = vpack.c.bf16 %v550_v11, %v549_v10 }
  0xb4   : > { %v562_v29 = vpack.c.bf16 %v554_v28, %v553_v26  ;;  %v2998_v28 = vld [vmem:[%s4269_s10 + $0x2] ss:$0 sm:$0xff] }
  0xbd   : > { %2649 = vmatmul.msk.bf16.gmra.mxu1 %vm599_vm1, %v557_v51 }
  0xcd   : > { %2650 = vmatmul.msk.bf16.gmra.mxu1 %vm599_vm1, %v558_v59 }
  0xdd   : > { %2651 = vmatmul.msk.bf16.gmra.mxu1 %vm599_vm1, %v559_v6 }
  0xed   : > { %2652 = vmatmul.msk.bf16.gmra.mxu1 %vm599_vm1, %v560_v13 }
  0xfd   : > { %2653 = vmatmul.msk.bf16.gmra.mxu1 %vm599_vm1, %v561_v19 }
 0x10d   : > { %2654 = vmatmul.msk.bf16.gmra.mxu1 %vm599_vm1, %v562_v29 }
 0x11a   : > { %v633_v31 = vpop.f32.mrf.mxu1 }
 0x11b   : > { %v634_v33 = vadd.f32 %v3343_v32, %v633_v31 }
 0x11d   : > { %v673_v36 = vmax.f32 %v634_v33, 0.0 }
 0x122   : > { %v635_v34 = vpop.f32.mrf.mxu1 }
 0x123   : > { %v636_v35 = vadd.f32 %v3343_v32, %v635_v34 }
 0x125   : > { %v674_v37 = vmax.f32 %v636_v35, 0.0 }
 0x127   : > { %v689_v38 = vpack.c.bf16 %v674_v37, %v673_v36 }
 0x129   : > { %773 = vmatmul.bf16.vlgmr.msrb.gmra.mxu2 %v689_v38 }
 0x12a   : > { %v638_v30 = vpop.f32.mrf.mxu1 }
 0x12b   : > { %v639_v39 = vadd.f32 %v3343_v32, %v638_v30 }
 0x12d   : > { %v675_v42 = vmax.f32 %v639_v39, 0.0 }
 0x132   : > { %v640_v40 = vpop.f32.mrf.mxu1 }
 0x133   : > { %v641_v41 = vadd.f32 %v3343_v32, %v640_v40 }
 0x135   : > { %v676_v43 = vmax.f32 %v641_v41, 0.0 }
 0x137   : > { %v690_v44 = vpack.c.bf16 %v676_v43, %v675_v42 }
 0x139   : > { %778 = vmatmul.bf16.gmra.mxu2 %v690_v44 }
 0x13a   : > { %v643_v45 = vpop.f32.mrf.mxu1 }
 0x13b   : > { %v644_v46 = vadd.f32 %v3343_v32, %v643_v45 }
 0x13d   : > { %v677_v49 = vmax.f32 %v644_v46, 0.0 }
 0x142   : > { %v645_v47 = vpop.f32.mrf.mxu1 }
 0x143   : > { %v646_v48 = vadd.f32 %v3343_v32, %v645_v47 }
 0x145   : > { %v678_v50 = vmax.f32 %v646_v48, 0.0 }
 0x147   : > { %v691_v51 = vpack.c.bf16 %v678_v50, %v677_v49 }
 0x149   : > { %783 = vmatmul.bf16.gmra.mxu2 %v691_v51 }
 0x14a   : > { %v648_v52 = vpop.f32.mrf.mxu1 }
 0x14b   : > { %v649_v53 = vadd.f32 %v3343_v32, %v648_v52 }
 0x14d   : > { %v679_v56 = vmax.f32 %v649_v53, 0.0 }
 0x152   : > { %v650_v54 = vpop.f32.mrf.mxu1 }
 0x153   : > { %v651_v55 = vadd.f32 %v3343_v32, %v650_v54 }
 0x155   : > { %v680_v57 = vmax.f32 %v651_v55, 0.0 }
 0x157   : > { %v692_v58 = vpack.c.bf16 %v680_v57, %v679_v56 }
 0x159   : > { %788 = vmatmul.bf16.gmra.mxu2 %v692_v58 }
 0x15a   : > { %v653_v59 = vpop.f32.mrf.mxu1 }
 0x15b   : > { %v654_v61 = vadd.f32 %v3343_v32, %v653_v59 }
 0x15d   : > { %v681_v63 = vmax.f32 %v654_v61, 0.0 }
 0x162   : > { %v655_v62 = vpop.f32.mrf.mxu1 }
 0x163   : > { %v656_v0 = vadd.f32 %v3343_v32, %v655_v62 }
 0x165   : > { %v682_v1 = vmax.f32 %v656_v0, 0.0 }
 0x167   : > { %v693_v3 = vpack.c.bf16 %v682_v1, %v681_v63 }
 0x169   : > { %793 = vmatmul.bf16.gmra.mxu2 %v693_v3 }
 0x16a   : > { %v658_v4 = vpop.f32.mrf.mxu1 }
 0x16b   : > { %v659_v6 = vadd.f32 %v3343_v32, %v658_v4 }
 0x16d   : > { %v683_v8 = vmax.f32 %v659_v6, 0.0 }
 0x172   : > { %v660_v7 = vpop.f32.mrf.mxu1 }
 0x173   : > { %v661_v9 = vadd.f32 %v3343_v32, %v660_v7 }
 0x175   : > { %v684_v10 = vmax.f32 %v661_v9, 0.0 }
 0x177   : > { %v694_v11 = vpack.c.bf16 %v684_v10, %v683_v8 }
 0x179   : > { %798 = vmatmul.bf16.gmra.mxu2 %v694_v11 }
 0x17a   : > { %v663_v12 = vpop.f32.mrf.mxu1 }
 0x17b   : > { %v664_v13 = vadd.f32 %v3343_v32, %v663_v12 }
 0x17d   : > { %v685_v15 = vmax.f32 %v664_v13, 0.0 }
 0x182   : > { %v665_v14 = vpop.f32.mrf.mxu1 }
 0x183   : > { %v666_v16 = vadd.f32 %v3343_v32, %v665_v14 }
 0x185   : > { %v686_v17 = vmax.f32 %v666_v16, 0.0 }
 0x187   : > { %v695_v18 = vpack.c.bf16 %v686_v17, %v685_v15 }
 0x189   : > { %803 = vmatmul.bf16.gmra.mxu2 %v695_v18 }
 0x18a   : > { %v668_v19 = vpop.f32.mrf.mxu1 }
 0x18b   : > { %v669_v20 = vadd.f32 %v3343_v32, %v668_v19 }
 0x18d   : > { %v687_v23 = vmax.f32 %v669_v20, 0.0  ;;  %v3387_v20 = vld [vmem:[%s4269_s10 + $0x3] ss:$0 sm:$0xff] }
 0x192   : > { %v670_v22 = vpop.f32.mrf.mxu1 }
 0x193   : > { %v671_v24 = vadd.f32 %v3343_v32, %v670_v22 }
 0x195   : > { %v688_v25 = vmax.f32 %v671_v24, 0.0 }
 0x197   : > { %v696_v26 = vpack.c.bf16 %v688_v25, %v687_v23 }
 0x199   : > { %808 = vmatmul.bf16.gmra.mxu2 %v696_v26 }
 0x1ac   : > { %v774_v27 = vpop.f32.mrf.mxu2 }
 0x1ad   : > { %v775_v29 = vadd.f32 %v2998_v28, %v774_v27 }
 0x1af   : > { %v814_v34 = vmax.f32 %v775_v29, 0.0 }
 0x1b4   : > { %v776_v31 = vpop.f32.mrf.mxu2 }
 0x1b5   : > { %v777_v33 = vadd.f32 %v2998_v28, %v776_v31 }
 0x1b7   : > { %v815_v35 = vmax.f32 %v777_v33, 0.0 }
 0x1b9   : > { %v830_v36 = vpack.c.bf16 %v815_v35, %v814_v34 }
 0x1bb   : > { %2703 = vmatmul.msk.bf16.vlgmr.msrb.gmra.mxu3 %vm599_vm1, %v830_v36 }
 0x1bc   : > { %v779_v37 = vpop.f32.mrf.mxu2 }
 0x1bd   : > { %v780_v38 = vadd.f32 %v2998_v28, %v779_v37 }
 0x1bf   : > { %v816_v39 = vmax.f32 %v780_v38, 0.0 }
 0x1c4   : > { %v781_v30 = vpop.f32.mrf.mxu2 }
 0x1c5   : > { %v782_v32 = vadd.f32 %v2998_v28, %v781_v30 }
 0x1c7   : > { %v817_v40 = vmax.f32 %v782_v32, 0.0 }
 0x1c9   : > { %v831_v41 = vpack.c.bf16 %v817_v40, %v816_v39 }
 0x1cb   : > { %2704 = vmatmul.msk.bf16.gmra.mxu3 %vm599_vm1, %v831_v41 }
 0x1cc   : > { %v784_v42 = vpop.f32.mrf.mxu2 }
 0x1cd   : > { %v785_v43 = vadd.f32 %v2998_v28, %v784_v42 }
 0x1cf   : > { %v818_v46 = vmax.f32 %v785_v43, 0.0 }
 0x1d4   : > { %v786_v44 = vpop.f32.mrf.mxu2 }
 0x1d5   : > { %v787_v45 = vadd.f32 %v2998_v28, %v786_v44 }
 0x1d7   : > { %v819_v47 = vmax.f32 %v787_v45, 0.0 }
 0x1d9   : > { %v832_v48 = vpack.c.bf16 %v819_v47, %v818_v46 }
 0x1db   : > { %2705 = vmatmul.msk.bf16.gmra.mxu3 %vm599_vm1, %v832_v48 }
 0x1dc   : > { %v789_v49 = vpop.f32.mrf.mxu2 }
 0x1dd   : > { %v790_v50 = vadd.f32 %v2998_v28, %v789_v49 }
 0x1df   : > { %v820_v53 = vmax.f32 %v790_v50, 0.0 }
 0x1e4   : > { %v791_v51 = vpop.f32.mrf.mxu2 }
 0x1e5   : > { %v792_v52 = vadd.f32 %v2998_v28, %v791_v51 }
 0x1e7   : > { %v821_v54 = vmax.f32 %v792_v52, 0.0 }
 0x1e9   : > { %v833_v55 = vpack.c.bf16 %v821_v54, %v820_v53 }
 0x1eb   : > { %2706 = vmatmul.msk.bf16.gmra.mxu3 %vm599_vm1, %v833_v55 }
 0x1ec   : > { %v794_v56 = vpop.f32.mrf.mxu2 }
 0x1ed   : > { %v795_v57 = vadd.f32 %v2998_v28, %v794_v56 }
 0x1ef   : > { %v822_v59 = vmax.f32 %v795_v57, 0.0 }
 0x1f4   : > { %v796_v58 = vpop.f32.mrf.mxu2 }
 0x1f5   : > { %v797_v60 = vadd.f32 %v2998_v28, %v796_v58 }
 0x1f7   : > { %v823_v61 = vmax.f32 %v797_v60, 0.0 }
 0x1f9   : > { %v834_v62 = vpack.c.bf16 %v823_v61, %v822_v59 }
 0x1fb   : > { %2707 = vmatmul.msk.bf16.gmra.mxu3 %vm599_vm1, %v834_v62 }
 0x1fc   : > { %v799_v63 = vpop.f32.mrf.mxu2 }
 0x1fd   : > { %v800_v0 = vadd.f32 %v2998_v28, %v799_v63 }
 0x1ff   : > { %v824_v2 = vmax.f32 %v800_v0, 0.0 }
 0x204   : > { %v801_v1 = vpop.f32.mrf.mxu2 }
 0x205   : > { %v802_v3 = vadd.f32 %v2998_v28, %v801_v1 }
 0x207   : > { %v825_v4 = vmax.f32 %v802_v3, 0.0 }
 0x209   : > { %v835_v5 = vpack.c.bf16 %v825_v4, %v824_v2 }
 0x20b   : > { %2708 = vmatmul.msk.bf16.gmra.mxu3 %vm599_vm1, %v835_v5 }
 0x20c   : > { %v804_v6 = vpop.f32.mrf.mxu2 }
 0x20d   : > { %v805_v7 = vadd.f32 %v2998_v28, %v804_v6 }
 0x20f   : > { %v826_v9 = vmax.f32 %v805_v7, 0.0 }
 0x214   : > { %v806_v8 = vpop.f32.mrf.mxu2 }
 0x215   : > { %v807_v10 = vadd.f32 %v2998_v28, %v806_v8 }
 0x217   : > { %v827_v11 = vmax.f32 %v807_v10, 0.0 }
 0x219   : > { %v836_v12 = vpack.c.bf16 %v827_v11, %v826_v9 }
 0x21b   : > { %2709 = vmatmul.msk.bf16.gmra.mxu3 %vm599_vm1, %v836_v12 }
 0x21c   : > { %v809_v13 = vpop.f32.mrf.mxu2 }
 0x21d   : > { %v810_v14 = vadd.f32 %v2998_v28, %v809_v13 }
 0x21f   : > { %v828_v16 = vmax.f32 %v810_v14, 0.0 }
 0x224   : > { %v811_v15 = vpop.f32.mrf.mxu2 }
 0x225   : > { %v812_v17 = vadd.f32 %v2998_v28, %v811_v15 }
 0x227   : > { %v829_v18 = vmax.f32 %v812_v17, 0.0 }
 0x229   : > { %v837_v19 = vpack.c.bf16 %v829_v18, %v828_v16 }
 0x22b   : > { %2710 = vmatmul.msk.bf16.gmra.mxu3 %vm599_vm1, %v837_v19 }
 0x23e   : > { %v907_v21 = vpop.f32.mrf.mxu3 }
 0x23f   : > { %v3390_v22 = vadd.f32 %v3387_v20, %v907_v21 }
 0x241   : > { %v948_v23 = vsel %vm947_vm2, %v3390_v22, -inf }
 0x242   : > { %949 = vmax.xlane.f32.xlu0 %v948_v23 }
 0x246   : > { %v909_v24 = vpop.f32.mrf.mxu3 }
 0x247   : > { %v3395_v25 = vadd.f32 %v3387_v20, %v909_v24 }
 0x249   : > { %v951_v26 = vsel %vm947_vm2, %v3395_v25, -inf }
 0x24a   : > { %952 = vmax.xlane.f32.xlu0 %v951_v26 }
 0x24e   : > { %v912_v27 = vpop.f32.mrf.mxu3 }
 0x24f   : > { %v3400_v28 = vadd.f32 %v3387_v20, %v912_v27 }
 0x251   : > { %v954_v29 = vsel %vm947_vm2, %v3400_v28, -inf }
 0x252   : > { %955 = vmax.xlane.f32.xlu1 %v954_v29  ;;  %v2944_v29 = vld [vmem:[%s4265_s6 + $0x14] sm:$0xf] }
 0x256   : > { %v914_v31 = vpop.f32.mrf.mxu3 }
 0x257   : > { %v3405_v33 = vadd.f32 %v3387_v20, %v914_v31  ;;  %v2723_v31 = vld [vmem:[%s4265_s6 + $0x18] sm:$0xf0] }
 0x259   : > { %v957_v34 = vsel %vm947_vm2, %v3405_v33, -inf }
 0x25a   : > { %958 = vmax.xlane.f32.xlu1 %v957_v34  ;;  %v2726_v34 = vor.u32 %v2944_v29, %v2723_v31  ;;  %v430_v29 = vld [vmem:[%s3543_s14 + $0x8] sm:$0xff] }
 0x25c   : > { %1499 = vmatpush.bf16.msra.mxu1 %v2726_v34 }
 0x25e   : > { %v917_v35 = vpop.f32.mrf.mxu3 }
 0x25f   : > { %v3410_v36 = vadd.f32 %v3387_v20, %v917_v35 }
 0x261   : > { %v960_v37 = vsel %vm947_vm2, %v3410_v36, -inf }
 0x262   : > { %961 = vmax.xlane.f32.xlu2 %v960_v37 }
 0x266   : > { %v919_v38 = vpop.f32.mrf.mxu3 }
 0x267   : > { %v3415_v30 = vadd.f32 %v3387_v20, %v919_v38 }
 0x269   : > { %v963_v32 = vsel %vm947_vm2, %v3415_v30, -inf }
 0x26a   : > { %964 = vmax.xlane.f32.xlu2 %v963_v32 }
 0x26e   : > { %v922_v39 = vpop.f32.mrf.mxu3 }
 0x26f   : > { %v3420_v40 = vadd.f32 %v3387_v20, %v922_v39 }
 0x271   : > { %v966_v41 = vsel %vm947_vm2, %v3420_v40, -inf }
 0x272   : > { %967 = vmax.xlane.f32.xlu0 %v966_v41 }
 0x276   : > { %v924_v42 = vpop.f32.mrf.mxu3 }
 0x277   : > { %v3425_v43 = vadd.f32 %v3387_v20, %v924_v42 }
 0x279   : > { %v969_v44 = vsel %vm947_vm2, %v3425_v43, -inf }
 0x27a   : > { %970 = vmax.xlane.f32.xlu1 %v969_v44 }
 0x27e   : > { %v927_v45 = vpop.f32.mrf.mxu3 }
 0x27f   : > { %v3430_v46 = vadd.f32 %v3387_v20, %v927_v45 }
 0x281   : > { %v972_v47 = vsel %vm947_vm2, %v3430_v46, -inf }
 0x282   : > { %973 = vmax.xlane.f32.xlu1 %v972_v47 }
 0x286   : > { %v929_v49 = vpop.f32.mrf.mxu3 }
 0x287   : > { %v3441_v58 = vadd.f32 %v3387_v20, %v929_v49 }
 0x289   : > { %v975_v63 = vsel %vm947_vm2, %v3441_v58, -inf }
 0x28e   : > { %v932_v55 = vpop.f32.mrf.mxu3 }
 0x28f   : > { %v3451_v2 = vadd.f32 %v3387_v20, %v932_v55 }
 0x291   : > { %v978_v7 = vsel %vm947_vm2, %v3451_v2, -inf }
 0x296   : > { %v934_v1 = vpop.f32.mrf.mxu3 }
 0x297   : > { %v3461_v10 = vadd.f32 %v3387_v20, %v934_v1  ;;  %v2721_v1 = vld [vmem:[%s4265_s6 + $0x10] sm:$0xf] }
 0x299   : > { %v981_v16 = vsel %vm947_vm2, %v3461_v10, -inf }
 0x29e   : > { %v937_v9 = vpop.f32.mrf.mxu3 }
 0x29f   : > { %v3471_v17 = vadd.f32 %v3387_v20, %v937_v9 }
 0x2a1   : > { %v984_v27 = vsel %vm947_vm2, %v3471_v17, -inf }
 0x2a6   : > { %v939_v19 = vpop.f32.mrf.mxu3 }
 0x2a7   : > { %v3487_v35 = vadd.f32 %v3387_v20, %v939_v19 }
 0x2a9   : > { %v987_v42 = vsel %vm947_vm2, %v3487_v35, -inf }
 0x2ae   : > { %v942_v39 = vpop.f32.mrf.mxu3 }
 0x2af   : > { %v3497_v45 = vadd.f32 %v3387_v20, %v942_v39 }
 0x2b5   : > { %v950_v48 = vpop.xlane.xlu0 %949 }
 0x2b6   : > { %v996_v50 = vsub.f32 %v3390_v22, %v950_v48 }
 0x2b8   : > { %v1012_v51 = vmul.f32 1.442695, %v996_v50 }
 0x2ba   : > { %3002 = vpow2.f32 %v1012_v51  ;;  %v990_v51 = vsel %vm947_vm2, %v3497_v45, -inf }
 0x2bd   : > { %v953_v52 = vpop.xlane.xlu0 %952 }
 0x2be   : > { %v997_v53 = vsub.f32 %v3395_v25, %v953_v52 }
 0x2c0   : > { %v3436_v54 = vpop.eup %3002  ;;  %v1014_v56 = vmul.f32 1.442695, %v997_v53  ;;  %v944_v53 = vpop.f32.mrf.mxu3 }
 0x2c1   : > { %v1044_v57 = vsel %vm947_vm2, %v3436_v54, 0.0  ;;  %v3507_v55 = vadd.f32 %v3387_v20, %v944_v53 }
 0x2c2   : > { %3004 = vpow2.f32 %v1014_v56  ;;  %1045 = vadd.xlane.f32.xlu2 %v1044_v57 }
 0x2c5   : > { %v956_v59 = vpop.xlane.xlu1 %955 }
 0x2c6   : > { %v998_v60 = vsub.f32 %v3400_v28, %v956_v59 }
 0x2c8   : > { %v3444_v61 = vpop.eup %3004  ;;  %v1016_v62 = vmul.f32 1.442695, %v998_v60 }
 0x2c9   : > { %v1047_v0 = vsel %vm947_vm2, %v3444_v61, 0.0 }
 0x2ca   : > { %3006 = vpow2.f32 %v1016_v62  ;;  %976 = vmax.xlane.f32.xlu2 %v975_v63  ;;  %1048 = vadd.xlane.f32.xlu0 %v1047_v0  ;;  %v993_v63 = vsel %vm947_vm2, %v3507_v55, -inf }
 0x2cd   : > { %v959_v3 = vpop.xlane.xlu1 %958 }
 0x2ce   : > { %v999_v4 = vsub.f32 %v3405_v33, %v959_v3  ;;  %v2945_v3 = vld [vmem:[%s4265_s6 + $0x14] sm:$0xf0] }
 0x2d0   : > { %v3454_v5 = vpop.eup %3006  ;;  %v1018_v6 = vmul.f32 1.442695, %v999_v4  ;;  %v2722_v4 = vor.u32 %v2945_v3, %v2721_v1 }
 0x2d1   : > { %v1050_v8 = vsel %vm947_vm2, %v3454_v5, 0.0 }
 0x2d2   : > { %3008 = vpow2.f32 %v1018_v6  ;;  %979 = vmax.xlane.f32.xlu2 %v978_v7  ;;  %1051 = vadd.xlane.f32.xlu0 %v1050_v8  ;;  %v2713_v6 = vld [vmem:[%s4265_s6] sm:$0xf]  ;;  %v2943_v7 = vld [vmem:[%s4265_s6 + $0x4] sm:$0xf0]  ;;  %v2942_v8 = vld [vmem:[%s4265_s6 + $0x4] sm:$0xf] }
 0x2d3   : > { %1450 = vmatpush.bf16.msrb.mxu0 %v2722_v4  ;;  %v2714_v9 = vor.u32 %v2943_v7, %v2713_v6 }
 0x2d5   : > { %v962_v11 = vpop.xlane.xlu2 %961 }
 0x2d6   : > { %v1000_v12 = vsub.f32 %v3410_v36, %v962_v11  ;;  %v2715_v11 = vld [vmem:[%s4265_s6 + $0x8] sm:$0xf0] }
 0x2d7   : > { %1451 = vmatpush.bf16.msrb.mxu0 %v2714_v9 }
 0x2d8   : > { %v3464_v13 = vpop.eup %3008  ;;  %v1020_v14 = vmul.f32 1.442695, %v1000_v12  ;;  %v2718_v12 = vor.u32 %v2942_v8, %v2715_v11 }
 0x2d9   : > { %v1053_v15 = vsel %vm947_vm2, %v3464_v13, 0.0 }
 0x2da   : > { %3010 = vpow2.f32 %v1020_v14  ;;  %1054 = vadd.xlane.f32.xlu1 %v1053_v15  ;;  %982 = vmax.xlane.f32.xlu0 %v981_v16 }
 0x2db   : > { %1500 = vmatpush.bf16.msra.mxu1 %v2718_v12 }
 0x2dd   : > { %v965_v18 = vpop.xlane.xlu2 %964 }
 0x2de   : > { %v1001_v21 = vsub.f32 %v3415_v30, %v965_v18 }
 0x2e0   : > { %v3474_v23 = vpop.eup %3010  ;;  %v1022_v24 = vmul.f32 1.442695, %v1001_v21 }
 0x2e1   : > { %v1056_v26 = vsel %vm947_vm2, %v3474_v23, 0.0 }
 0x2e2   : > { %3012 = vpow2.f32 %v1022_v24  ;;  %1057 = vadd.xlane.f32.xlu1 %v1056_v26  ;;  %985 = vmax.xlane.f32.xlu0 %v984_v27  ;;  %v429_v27 = vld [vmem:[%s3543_s14] sm:$0xff] }
 0x2e5   : > { %v968_v37 = vpop.xlane.xlu0 %967 }
 0x2e6   : > { %v1002_v38 = vsub.f32 %v3420_v40, %v968_v37 }
 0x2e8   : > { %v3490_v32 = vpop.eup %3012  ;;  %v1024_v41 = vmul.f32 1.442695, %v1002_v38 }
 0x2e9   : > { %v1059_v44 = vsel %vm947_vm2, %v3490_v32, 0.0 }
 0x2ea   : > { %3014 = vpow2.f32 %v1024_v41  ;;  %988 = vmax.xlane.f32.xlu1 %v987_v42  ;;  %1060 = vadd.xlane.f32.xlu2 %v1059_v44 }
 0x2ed   : > { %v971_v47 = vpop.xlane.xlu1 %970 }
 0x2ee   : > { %v1003_v48 = vsub.f32 %v3425_v43, %v971_v47 }
 0x2f0   : > { %v3500_v49 = vpop.eup %3014  ;;  %v1026_v50 = vmul.f32 1.442695, %v1003_v48 }
 0x2f1   : > { %v1062_v52 = vsel %vm947_vm2, %v3500_v49, 0.0 }
 0x2f2   : > { %3016 = vpow2.f32 %v1026_v50  ;;  %991 = vmax.xlane.f32.xlu1 %v990_v51  ;;  %1063 = vadd.xlane.f32.xlu2 %v1062_v52 }
 0x2f5   : > { %v974_v56 = vpop.xlane.xlu1 %973 }
 0x2f6   : > { %v1004_v57 = vsub.f32 %v3430_v46, %v974_v56 }
 0x2f8   : > { %v3510_v59 = vpop.eup %3016  ;;  %v1028_v60 = vmul.f32 1.442695, %v1004_v57 }
 0x2f9   : > { %v1065_v62 = vsel %vm947_vm2, %v3510_v59, 0.0 }
 0x2fa   : > { %3018 = vpow2.f32 %v1028_v60  ;;  %1066 = vadd.xlane.f32.xlu0 %v1065_v62  ;;  %994 = vmax.xlane.f32.xlu2 %v993_v63  ;;  %v431_v62 = vld [vmem:[%s3543_s14 + $0x10] sm:$0xff]  ;;  %v432_v63 = vld [vmem:[%s3543_s14 + $0x18] sm:$0xff] }
 0x300   : > { %v3516_v0 = vpop.eup %3018 }
 0x301   : > { %v1068_v20 = vsel %vm947_vm2, %v3516_v0, 0.0 }
 0x302   : > { %1069 = vadd.xlane.f32.xlu0 %v1068_v20 }
 0x335   : > { %v1046_v14 = vpop.xlane.xlu2 %1045 }
 0x336   : > { %3020 = vrcp.f32 %v1046_v14 }
 0x33c   : > { %v3021_v19 = vpop.eup %3020 }
 0x33d   : > { %v977_v15 = vpop.xlane.xlu2 %976  ;;  %v1049_v16 = vpop.xlane.xlu0 %1048  ;;  %v1108_v24 = vmul.f32 %v3021_v19, %v3436_v54 }
 0x33e   : > { %v1005_v18 = vsub.f32 %v3441_v58, %v977_v15  ;;  %3022 = vrcp.f32 %v1049_v16 }
 0x33f   : > { %v1366_v39 = vmul.f32 %v1108_v24, %v429_v27  ;;  %v434_v27 = vld [vmem:[%s3543_s14 + $0x28] sm:$0xff] }
 0x340   : > { %v1030_v21 = vmul.f32 1.442695, %v1005_v18 }
 0x342   : > { %3024 = vpow2.f32 %v1030_v21 }
 0x344   : > { %v3023_v26 = vpop.eup %3022 }
 0x345   : > { %v1109_v31 = vmul.f32 %v3023_v26, %v3444_v61  ;;  %v980_v34 = vpop.xlane.xlu2 %979  ;;  %v1052_v37 = vpop.xlane.xlu0 %1051  ;;  %v433_v26 = vld [vmem:[%s3543_s14 + $0x20] sm:$0xff] }
 0x346   : > { %v1006_v38 = vsub.f32 %v3451_v2, %v980_v34  ;;  %3026 = vrcp.f32 %v1052_v37 }
 0x347   : > { %v1367_v41 = vmul.f32 %v1109_v31, %v430_v29 }
 0x348   : > { %v3550_v42 = vpop.eup %3024  ;;  %v1032_v44 = vmul.f32 1.442695, %v1006_v38 }
 0x349   : > { %v1071_v47 = vsel %vm947_vm2, %v3550_v42, 0.0  ;;  %v1382_v48 = vpack.c.bf16 %v1367_v41, %v1366_v39 }
 0x34a   : > { %3028 = vpow2.f32 %v1032_v44  ;;  %1072 = vadd.xlane.f32.xlu1 %v1071_v47 }
 0x34b   : > { %2727 = vmatmul.msk.bf16.vlgmr.msrb.gmra.mxu0 %vm947_vm2, %v1382_v48  ;;  %2735 = vmatmul.msk.bf16.vlgmr.msra.gmra.mxu1 %vm947_vm2, %v1382_v48 }
 0x34c   : > { %v3027_v51 = vpop.eup %3026 }
 0x34d   : > { %v1055_v54 = vpop.xlane.xlu1 %1054  ;;  %v983_v61 = vpop.xlane.xlu0 %982  ;;  %v1110_v57 = vmul.f32 %v3027_v51, %v3454_v5 }
 0x34e   : > { %3030 = vrcp.f32 %v1055_v54  ;;  %v1007_v50 = vsub.f32 %v3461_v10, %v983_v61 }
 0x34f   : > { %v1368_v6 = vmul.f32 %v1110_v57, %v431_v62  ;;  %v2961_v62 = vld [vmem:[%s4266_s7 + $0x74] sm:$0xf0] }
 0x350   : > { %v3557_v52 = vpop.eup %3028  ;;  %v1034_v53 = vmul.f32 1.442695, %v1007_v50 }
 0x351   : > { %v1074_v56 = vsel %vm947_vm2, %v3557_v52, 0.0 }
 0x352   : > { %3032 = vpow2.f32 %v1034_v53  ;;  %1075 = vadd.xlane.f32.xlu2 %v1074_v56  ;;  %v1125_v53 = vsel %vm1124_vm3, %v3390_v22, -inf }
 0x354   : > { %v3031_v60 = vpop.eup %3030 }
 0x355   : > { %v1111_v20 = vmul.f32 %v3031_v60, %v3464_v13  ;;  %v1058_v1 = vpop.xlane.xlu1 %1057  ;;  %v986_v3 = vpop.xlane.xlu0 %985  ;;  %v2801_v60 = vld [vmem:[%s4266_s7 + $0x70] sm:$0xf] }
 0x356   : > { %v1008_v4 = vsub.f32 %v3471_v17, %v986_v3  ;;  %3034 = vrcp.f32 %v1058_v1  ;;  %v435_v1 = vld [vmem:[%s3543_s14 + $0x30] sm:$0xff]  ;;  %v436_v3 = vld [vmem:[%s3543_s14 + $0x38] sm:$0xff] }
 0x357   : > { %v1369_v7 = vmul.f32 %v1111_v20, %v432_v63  ;;  %v1614_v63 = vld [vmem:[%s4266_s7 + $0xc0] sm:$0xff] }
 0x358   : > { %v3566_v8 = vpop.eup %3032  ;;  %v1036_v9 = vmul.f32 1.442695, %v1008_v4  ;;  %v2802_v4 = vor.u32 %v2961_v62, %v2801_v60  ;;  %v1152_v62 = vsel %vm1124_vm3, %v3441_v58, -inf }
 0x359   : > { %v1077_v11 = vsel %vm947_vm2, %v3566_v8, 0.0  ;;  %v1383_v12 = vpack.c.bf16 %v1369_v7, %v1368_v6  ;;  %v1694_v6 = vunpack.c.l.b16 %v1614_v63 }
 0x35a   : > { %3036 = vpow2.f32 %v1036_v9  ;;  %1078 = vadd.xlane.f32.xlu0 %v1077_v11  ;;  %1778 = vmatpush.bf16.msra.mxu3 %v2802_v4  ;;  %v1149_v4 = vsel %vm1124_vm3, %v3430_v46, -inf }
 0x35b   : > { %2728 = vmatmul.msk.bf16.gmra.mxu0 %vm947_vm2, %v1383_v12  ;;  %2736 = vmatmul.msk.bf16.gmra.mxu1 %vm947_vm2, %v1383_v12 }
 0x35c   : > { %v3035_v15 = vpop.eup %3034 }
 0x35d   : > { %v989_v5 = vpop.xlane.xlu1 %988  ;;  %v1061_v13 = vpop.xlane.xlu2 %1060  ;;  %v1112_v21 = vmul.f32 %v3035_v15, %v3474_v23 }
 0x35e   : > { %v1009_v14 = vsub.f32 %v3487_v35, %v989_v5  ;;  %3038 = vrcp.f32 %v1061_v13  ;;  %v1134_v13 = vsel %vm1124_vm3, %v3405_v33, -inf }
 0x35f   : > { %v1370_v38 = vmul.f32 %v1112_v21, %v433_v26  ;;  %v1695_v21 = vunpack.c.h.b16 %v1614_v63  ;;  %v1146_v63 = vsel %vm1124_vm3, %v3425_v43, -inf }
 0x360   : > { %v3573_v16 = vpop.eup %3036  ;;  %v1038_v18 = vmul.f32 1.442695, %v1009_v14  ;;  %v1128_v14 = vsel %vm1124_vm3, %v3395_v25, -inf }
 0x361   : > { %v1080_v19 = vsel %vm947_vm2, %v3573_v16, 0.0  ;;  %v1721_v26 = vpack.c.b16 %v1695_v21, %v1695_v21 }
 0x362   : > { %3040 = vpow2.f32 %v1038_v18  ;;  %1081 = vadd.xlane.f32.xlu1 %v1080_v19  ;;  %v2803_v19 = vld [vmem:[%s4266_s7 + $0x78] sm:$0xf0] }
 0x364   : > { %v3039_v24 = vpop.eup %3038 }
 0x365   : > { %v1113_v29 = vmul.f32 %v3039_v24, %v3490_v32  ;;  %v992_v31 = vpop.xlane.xlu1 %991  ;;  %v1064_v34 = vpop.xlane.xlu2 %1063 }
 0x366   : > { %v1010_v37 = vsub.f32 %v3497_v45, %v992_v31  ;;  %3042 = vrcp.f32 %v1064_v34  ;;  %v1137_v31 = vsel %vm1124_vm3, %v3410_v36, -inf  ;;  %v1131_v34 = vsel %vm1124_vm3, %v3400_v28, -inf }
 0x367   : > { %v1371_v39 = vmul.f32 %v1113_v29, %v434_v27  ;;  %v1776_v27 = vsel %vm1771_vm4, %v1721_v26, 0  ;;  %v1143_v29 = vsel %vm1124_vm3, %v3420_v40, -inf  ;;  %v2951_v26 = vld [vmem:[%s4266_s7 + $0x24] sm:$0xf0] }
 0x368   : > { %v3582_v41 = vpop.eup %3040  ;;  %v1040_v44 = vmul.f32 1.442695, %v1010_v37  ;;  %1928 = vmatpush.bf16.msrb.mxu1 %v1776_v27  ;;  %v2793_v37 = vld [vmem:[%s4266_s7 + $0x60] sm:$0xf] }
 0x369   : > { %v1083_v47 = vsel %vm947_vm2, %v3582_v41, 0.0  ;;  %v1384_v48 = vpack.c.bf16 %v1371_v39, %v1370_v38  ;;  %v2959_v38 = vld [vmem:[%s4266_s7 + $0x64] sm:$0xf0]  ;;  %v2958_v39 = vld [vmem:[%s4266_s7 + $0x64] sm:$0xf] }
 0x36a   : > { %3044 = vpow2.f32 %v1040_v44  ;;  %1084 = vadd.xlane.f32.xlu2 %v1083_v47  ;;  %v2794_v44 = vor.u32 %v2959_v38, %v2793_v37  ;;  %v2795_v47 = vld [vmem:[%s4266_s7 + $0x68] sm:$0xf0]  ;;  %v2825_v27 = vld [vmem:[%s4266_s7 + $0xa0] sm:$0xf]  ;;  %v2753_v37 = vld [vmem:[%s4266_s7 + $0x10] sm:$0xf] }
 0x36b   : > { %2729 = vmatmul.msk.bf16.gmra.mxu0 %vm947_vm2, %v1384_v48  ;;  %2737 = vmatmul.msk.bf16.gmra.mxu1 %vm947_vm2, %v1384_v48  ;;  %v2833_v48 = vld [vmem:[%s4266_s7 + $0xb0] sm:$0xf]  ;;  %v2949_v38 = vld [vmem:[%s4266_s7 + $0x14] sm:$0xf0] }
 0x36c   : > { %v3043_v61 = vpop.eup %3042  ;;  %1779 = vmatpush.bf16.msra.mxu3 %v2794_v44  ;;  %v2754_v44 = vor.u32 %v2949_v38, %v2753_v37 }
 0x36d   : > { %v995_v23 = vpop.xlane.xlu2 %994  ;;  %v1067_v32 = vpop.xlane.xlu0 %1066  ;;  %v1114_v57 = vmul.f32 %v3043_v61, %v3500_v49  ;;  %v1720_v49 = vpack.c.b16 %v1694_v6, %v1694_v6  ;;  %v2785_v61 = vld [vmem:[%s4266_s7 + $0x50] sm:$0xf]  ;;  %v1170_v6 = vsel %vm1124_vm3, %v3507_v55, -inf }
 0x36e   : > { %v1011_v54 = vsub.f32 %v3507_v55, %v995_v23  ;;  %3046 = vrcp.f32 %v1067_v32  ;;  %v2969_v23 = vld [vmem:[%s4266_s7 + $0xb4] sm:$0xf0]  ;;  %v2798_v32 = vor.u32 %v2958_v39, %v2795_v47  ;;  %v2817_v39 = vld [vmem:[%s4266_s7 + $0x90] sm:$0xf] }
 0x36f   : > { %v1372_v9 = vmul.f32 %v1114_v57, %v435_v1  ;;  %v1773_v5 = vsel %vm1771_vm4, %v1720_v49, 0  ;;  %v1161_v1 = vsel %vm1124_vm3, %v3471_v17, -inf  ;;  %v1158_v49 = vsel %vm1124_vm3, %v3461_v10, -inf  ;;  %v2965_v47 = vld [vmem:[%s4266_s7 + $0x94] sm:$0xf0] }
 0x370   : > { %v3589_v50 = vpop.eup %3044  ;;  %v1042_v51 = vmul.f32 1.442695, %v1011_v54  ;;  %1830 = vmatpush.bf16.msra.mxu2 %v1773_v5  ;;  %v2834_v54 = vor.u32 %v2969_v23, %v2833_v48  ;;  %v2955_v5 = vld [vmem:[%s4266_s7 + $0x44] sm:$0xf0]  ;;  %v2818_v48 = vor.u32 %v2965_v47, %v2817_v39  ;;  %v2745_v23 = vld [vmem:[%s4266_s7] sm:$0xf] }
 0x371   : > { %v1086_v56 = vsel %vm947_vm2, %v3589_v50, 0.0 }
 0x372   : > { %3048 = vpow2.f32 %v1042_v51  ;;  %1126 = vmax.xlane.f32.xlu2 %v1125_v53  ;;  %1087 = vadd.xlane.f32.xlu0 %v1086_v56  ;;  %v2957_v51 = vld [vmem:[%s4266_s7 + $0x54] sm:$0xf0]  ;;  %v2968_v53 = vld [vmem:[%s4266_s7 + $0xb4] sm:$0xf]  ;;  %v2835_v56 = vld [vmem:[%s4266_s7 + $0xb8] sm:$0xf0] }
 0x373   : > { %v2786_v57 = vor.u32 %v2957_v51, %v2785_v61  ;;  %v2838_v60 = vor.u32 %v2968_v53, %v2835_v56  ;;  %v2963_v51 = vld [vmem:[%s4266_s7 + $0x84] sm:$0xf0]  ;;  %v2954_v56 = vld [vmem:[%s4266_s7 + $0x44] sm:$0xf] }
 0x374   : > { %v3047_v20 = vpop.eup %3046  ;;  %1831 = vmatpush.bf16.msra.mxu2 %v2834_v54  ;;  %v2809_v54 = vld [vmem:[%s4266_s7 + $0x80] sm:$0xf] }
 0x375   : > { %v1115_v7 = vmul.f32 %v3047_v20, %v3510_v59  ;;  %v2960_v59 = vld [vmem:[%s4266_s7 + $0x74] sm:$0xf]  ;;  %1929 = vmatpush.bf16.msrb.mxu1 %v2838_v60  ;;  %v1140_v20 = vsel %vm1124_vm3, %v3415_v30, -inf  ;;  %1780 = vmatpush.bf16.msra.mxu3 %v2786_v57  ;;  %v2810_v53 = vor.u32 %v2963_v51, %v2809_v54  ;;  %v2779_v57 = vld [vmem:[%s4266_s7 + $0x48] sm:$0xf0] }
 0x376   : > { %v2806_v24 = vor.u32 %v2960_v59, %v2803_v19  ;;  %v2769_v59 = vld [vmem:[%s4266_s7 + $0x30] sm:$0xf]  ;;  %v2953_v19 = vld [vmem:[%s4266_s7 + $0x34] sm:$0xf0]  ;;  %v2966_v60 = vld [vmem:[%s4266_s7 + $0xa4] sm:$0xf] }
 0x377   : > { %v1373_v11 = vmul.f32 %v1115_v7, %v436_v3  ;;  %v1155_v3 = vsel %vm1124_vm3, %v3451_v2, -inf  ;;  %v1164_v7 = vsel %vm1124_vm3, %v3487_v35, -inf  ;;  %v2770_v21 = vor.u32 %v2953_v19, %v2769_v59  ;;  %v439_v51 = vld [vmem:[%s3543_s14 + $0x50] sm:$0xff] }
 0x378   : > { %v3608_v12 = vpop.eup %3048  ;;  %1876 = vmatpush.bf16.msra.mxu0 %v2806_v24  ;;  %v2761_v24 = vld [vmem:[%s4266_s7 + $0x20] sm:$0xf] }
 0x379   : > { %v1089_v15 = vsel %vm947_vm2, %v3608_v12, 0.0  ;;  %v1385_v18 = vpack.c.bf16 %v1373_v11, %v1372_v9  ;;  %v1167_v9 = vsel %vm1124_vm3, %v3497_v45, -inf  ;;  %v2777_v11 = vld [vmem:[%s4266_s7 + $0x40] sm:$0xf] }
 0x37a   : > { %1135 = vmax.xlane.f32.xlu2 %v1134_v13  ;;  %1129 = vmax.xlane.f32.xlu0 %v1128_v14  ;;  %v2778_v13 = vor.u32 %v2955_v5, %v2777_v11  ;;  %v2956_v14 = vld [vmem:[%s4266_s7 + $0x54] sm:$0xf] }
 0x37b   : > { %1090 = vadd.xlane.f32.xlu1 %v1089_v15  ;;  %2730 = vmatmul.msk.bf16.gmra.mxu0 %vm947_vm2, %v1385_v18  ;;  %v2787_v15 = vld [vmem:[%s4266_s7 + $0x58] sm:$0xf0]  ;;  %v2952_v5 = vld [vmem:[%s4266_s7 + $0x34] sm:$0xf] }
 0x37c   : > { %2738 = vmatmul.msk.bf16.gmra.mxu1 %vm947_vm2, %v1385_v18  ;;  %1877 = vmatpush.bf16.msra.mxu0 %v2798_v32  ;;  %v2790_v18 = vor.u32 %v2956_v14, %v2787_v15  ;;  %v2947_v32 = vld [vmem:[%s4266_s7 + $0x4] sm:$0xf0] }
 0x37d   : > { %1781 = vmatpush.bf16.msra.mxu3 %v2778_v13  ;;  %v2746_v61 = vor.u32 %v2947_v32, %v2745_v23  ;;  %v2771_v13 = vld [vmem:[%s4266_s7 + $0x38] sm:$0xf0] }
 0x37e   : > { %v2774_v14 = vor.u32 %v2952_v5, %v2771_v13 }
 0x380   : > { %1878 = vmatpush.bf16.msra.mxu0 %v2790_v18  ;;  %v1394_v18 = vld [vmem:[%s4269_s10 + $0x4] sm:$0x3] }
 0x381   : > { %1782 = vmatpush.bf16.msra.mxu3 %v2770_v21 }
 0x382   : > { %1144 = vmax.xlane.f32.xlu2 %v1143_v29  ;;  %1138 = vmax.xlane.f32.xlu0 %v1137_v31  ;;  %v2762_v29 = vor.u32 %v2951_v26, %v2761_v24  ;;  %v2967_v31 = vld [vmem:[%s4266_s7 + $0xa4] sm:$0xf0]  ;;  %v3761_v24 = vperm.slane %v1394_v18, 0  ;;  %v3763_v26 = vperm.slane %v1394_v18, 1 }
 0x383   : > { %1132 = vmax.xlane.f32.xlu1 %v1131_v34  ;;  %v2826_v34 = vor.u32 %v2967_v31, %v2825_v27 }
 0x385   : > { %1783 = vmatpush.bf16.msra.mxu3 %v2762_v29  ;;  %1832 = vmatpush.bf16.msra.mxu2 %v2826_v34 }
 0x389   : > { %1784 = vmatpush.bf16.msra.mxu3 %v2754_v44  ;;  %1833 = vmatpush.bf16.msra.mxu2 %v2818_v48 }
 0x38a   : > { %1153 = vmax.xlane.f32.xlu2 %v1152_v62  ;;  %1147 = vmax.xlane.f32.xlu0 %v1146_v63  ;;  %v2782_v62 = vor.u32 %v2954_v56, %v2779_v57  ;;  %v2827_v63 = vld [vmem:[%s4266_s7 + $0xa8] sm:$0xf0] }
 0x38b   : > { %1141 = vmax.xlane.f32.xlu1 %v1140_v20  ;;  %v1070_v20 = vpop.xlane.xlu0 %1069 }
 0x38c   : > { %1879 = vmatpush.bf16.msra.mxu0 %v2782_v62  ;;  %3050 = vrcp.f32 %v1070_v20  ;;  %v2964_v62 = vld [vmem:[%s4266_s7 + $0x94] sm:$0xf] }
 0x38d   : > { %1785 = vmatpush.bf16.msra.mxu3 %v2746_v61  ;;  %1834 = vmatpush.bf16.msra.mxu2 %v2810_v53  ;;  %v440_v53 = vld [vmem:[%s3543_s14 + $0x58] sm:$0xff] }
 0x390   : > { %1880 = vmatpush.bf16.msra.mxu0 %v2774_v14 }
 0x392   : > { %1162 = vmax.xlane.f32.xlu2 %v1161_v1  ;;  %1156 = vmax.xlane.f32.xlu0 %v1155_v3  ;;  %v2830_v1 = vor.u32 %v2966_v60, %v2827_v63  ;;  %v2950_v63 = vld [vmem:[%s4266_s7 + $0x24] sm:$0xf] }
 0x393   : > { %1150 = vmax.xlane.f32.xlu1 %v1149_v4  ;;  %v3051_v4 = vpop.eup %3050 }
 0x394   : > { %1930 = vmatpush.bf16.msrb.mxu1 %v2830_v1 }
 0x39a   : > { %1171 = vmax.xlane.f32.xlu2 %v1170_v6  ;;  %1165 = vmax.xlane.f32.xlu0 %v1164_v7  ;;  %v1116_v6 = vmul.f32 %v3051_v4, %v3516_v0  ;;  %v2763_v4 = vld [vmem:[%s4266_s7 + $0x28] sm:$0xf0] }
 0x39b   : > { %1159 = vmax.xlane.f32.xlu1 %v1158_v49  ;;  %v437_v49 = vld [vmem:[%s3543_s14 + $0x40] sm:$0xff] }
 0x39c   : > { %v1374_v0 = vmul.f32 %v1116_v6, %v437_v49  ;;  %v2766_v49 = vor.u32 %v2950_v63, %v2763_v4 }
 0x39e   : > { %1881 = vmatpush.bf16.msra.mxu0 %v2766_v49 }
 0x3a3   : > { %1168 = vmax.xlane.f32.xlu1 %v1167_v9  ;;  %v438_v9 = vld [vmem:[%s3543_s14 + $0x48] sm:$0xff] }
 0x3bd   : > { %v1073_v3 = vpop.xlane.xlu1 %1072 }
 0x3be   : > { %3052 = vrcp.f32 %v1073_v3 }
 0x3c4   : > { %v3053_v7 = vpop.eup %3052 }
 0x3c5   : > { %v1117_v11 = vmul.f32 %v3053_v7, %v3550_v42  ;;  %v1076_v15 = vpop.xlane.xlu2 %1075 }
 0x3c6   : > { %3054 = vrcp.f32 %v1076_v15 }
 0x3c7   : > { %v1375_v59 = vmul.f32 %v1117_v11, %v438_v9 }
 0x3c8   : > { %v1453_v19 = vpop.f32.mrf.mxu0  ;;  %v1502_v21 = vpop.f32.mrf.mxu1 }
 0x3c9   : > { %v1386_v42 = vpack.c.bf16 %v1375_v59, %v1374_v0  ;;  %v1454_v29 = vadd.f32 %v1453_v19, %v3761_v24  ;;  %v1503_v31 = vadd.f32 %v1502_v21, %v3763_v26 }
 0x3cb   : > { %2731 = vmatmul.msk.bf16.gmra.mxu0 %vm947_vm2, %v1386_v42  ;;  %2739 = vmatmul.msk.bf16.gmra.mxu1 %vm947_vm2, %v1386_v42  ;;  %v1542_v47 = vmax.f32 %v1454_v29, 0.0  ;;  %v1543_v23 = vmax.f32 %v1503_v31, 0.0  ;;  %v2948_v31 = vld [vmem:[%s4266_s7 + $0x14] sm:$0xf] }
 0x3cc   : > { %v3055_v34 = vpop.eup %3054 }
 0x3cd   : > { %v1079_v27 = vpop.xlane.xlu0 %1078  ;;  %v1118_v48 = vmul.f32 %v3055_v34, %v3557_v52  ;;  %v2819_v52 = vld [vmem:[%s4266_s7 + $0x98] sm:$0xf0] }
 0x3ce   : > { %3056 = vrcp.f32 %v1079_v27  ;;  %v2822_v3 = vor.u32 %v2964_v62, %v2819_v52  ;;  %v2755_v34 = vld [vmem:[%s4266_s7 + $0x18] sm:$0xf0] }
 0x3d0   : > { %v1455_v37 = vpop.f32.mrf.mxu0  ;;  %v1504_v38 = vpop.f32.mrf.mxu1  ;;  %1931 = vmatpush.bf16.msrb.mxu1 %v2822_v3 }
 0x3d1   : > { %v1456_v39 = vadd.f32 %v1455_v37, %v3761_v24  ;;  %v1505_v44 = vadd.f32 %v1504_v38, %v3763_v26  ;;  %v441_v38 = vld [vmem:[%s3543_s14 + $0x60] sm:$0xff] }
 0x3d3   : > { %v1544_v32 = vmax.f32 %v1456_v39, 0.0  ;;  %v1545_v54 = vmax.f32 %v1505_v44, 0.0  ;;  %v442_v39 = vld [vmem:[%s3543_s14 + $0x68] sm:$0xff]  ;;  %v2758_v44 = vor.u32 %v2948_v31, %v2755_v34 }
 0x3d4   : > { %v3057_v61 = vpop.eup %3056 }
 0x3d5   : > { %v1119_v56 = vmul.f32 %v3057_v61, %v3566_v8  ;;  %v3775_v57 = vpack.c.bf16 %v1544_v32, %v1542_v47  ;;  %v3777_v60 = vpack.c.bf16 %v1545_v54, %v1543_v23  ;;  %v1082_v20 = vpop.xlane.xlu1 %1081  ;;  %v1376_v8 = vmul.f32 %v1118_v48, %v439_v51  ;;  %1882 = vmatpush.bf16.msra.mxu0 %v2758_v44  ;;  %v444_v44 = vld [vmem:[%s3543_s14 + $0x78] sm:$0xff] }
 0x3d6   : > { %3058 = vrcp.f32 %v1082_v20  ;;  %v2811_v20 = vld [vmem:[%s4266_s7 + $0x88] sm:$0xf0] }
 0x3d7   : > { %1786 = vmatmul.bf16.vlgmr.msra.gmra.mxu3 %v3775_v57  ;;  %2839 = vmatmul.msk.bf16.vlgmr.msra.gmra.mxu2 %vm1746_vm5, %v3777_v60  ;;  %v1377_v1 = vmul.f32 %v1119_v56, %v440_v53  ;;  %v2747_v53 = vld [vmem:[%s4266_s7 + $0x8] sm:$0xf0] }
 0x3d8   : > { %v1458_v6 = vpop.f32.mrf.mxu0  ;;  %v1507_v7 = vpop.f32.mrf.mxu1 }
 0x3d9   : > { %v1387_v9 = vpack.c.bf16 %v1377_v1, %v1376_v8  ;;  %v1459_v5 = vadd.f32 %v1458_v6, %v3761_v24  ;;  %v1508_v13 = vadd.f32 %v1507_v7, %v3763_v26 }
 0x3db   : > { %2732 = vmatmul.msk.bf16.gmra.mxu0 %vm947_vm2, %v1387_v9  ;;  %2740 = vmatmul.msk.bf16.gmra.mxu1 %vm947_vm2, %v1387_v9  ;;  %v1546_v19 = vmax.f32 %v1459_v5, 0.0  ;;  %v1547_v21 = vmax.f32 %v1508_v13, 0.0 }
 0x3dc   : > { %v3059_v14 = vpop.eup %3058 }
 0x3dd   : > { %v1085_v11 = vpop.xlane.xlu2 %1084  ;;  %v1120_v42 = vmul.f32 %v3059_v14, %v3573_v16 }
 0x3de   : > { %3060 = vrcp.f32 %v1085_v11 }
 0x3df   : > { %v1378_v61 = vmul.f32 %v1120_v42, %v441_v38 }
 0x3e0   : > { %v1460_v15 = vpop.f32.mrf.mxu0  ;;  %v1509_v18 = vpop.f32.mrf.mxu1 }
 0x3e1   : > { %v1461_v0 = vadd.f32 %v1460_v15, %v3761_v24  ;;  %v1510_v59 = vadd.f32 %v1509_v18, %v3763_v26 }
 0x3e3   : > { %v1548_v27 = vmax.f32 %v1461_v0, 0.0  ;;  %v1549_v29 = vmax.f32 %v1510_v59, 0.0 }
 0x3e4   : > { %v3061_v37 = vpop.eup %3060 }
 0x3e5   : > { %v1121_v47 = vmul.f32 %v3061_v37, %v3582_v41  ;;  %v1127_v48 = vpop.xlane.xlu2 %1126  ;;  %v1088_v23 = vpop.xlane.xlu0 %1087  ;;  %v3810_v32 = vpack.c.bf16 %v1548_v27, %v1546_v19  ;;  %v3812_v16 = vpack.c.bf16 %v1549_v29, %v1547_v21  ;;  %v2946_v41 = vld [vmem:[%s4266_s7 + $0x4] sm:$0xf] }
 0x3e6   : > { %v1173_v54 = vsub.f32 %v3390_v22, %v1127_v48  ;;  %v2962_v22 = vld [vmem:[%s4266_s7 + $0x84] sm:$0xf]  ;;  %v2750_v63 = vor.u32 %v2946_v41, %v2747_v53 }
 0x3e7   : > { %1791 = vmatmul.bf16.gmra.mxu3 %v3810_v32  ;;  %2840 = vmatmul.msk.bf16.gmra.mxu2 %vm1746_vm5, %v3812_v16  ;;  %v1379_v51 = vmul.f32 %v1121_v47, %v442_v39  ;;  %v2814_v1 = vor.u32 %v2962_v22, %v2811_v20  ;;  %v443_v39 = vld [vmem:[%s3543_s14 + $0x70] sm:$0xff] }
 0x3e8   : > { %v1189_v56 = vmul.f32 1.442695, %v1173_v54  ;;  %v1463_v62 = vpop.f32.mrf.mxu0  ;;  %v1512_v52 = vpop.f32.mrf.mxu1  ;;  %1883 = vmatpush.bf16.msra.mxu0 %v2750_v63 }
 0x3e9   : > { %v1388_v8 = vpack.c.bf16 %v1379_v51, %v1378_v61  ;;  %1932 = vmatpush.bf16.msrb.mxu1 %v2814_v1  ;;  %v1464_v6 = vadd.f32 %v1463_v62, %v3761_v24  ;;  %v1513_v11 = vadd.f32 %v1512_v52, %v3763_v26 }
 0x3ea   : > { %3062 = vpow2.f32 %v1189_v56 }
 0x3eb   : > { %3064 = vrcp.f32 %v1088_v23  ;;  %2733 = vmatmul.msk.bf16.gmra.mxu0 %vm947_vm2, %v1388_v8  ;;  %2741 = vmatmul.msk.bf16.gmra.mxu1 %vm947_vm2, %v1388_v8 }
 0x3ed   : > { %v1136_v3 = vpop.xlane.xlu2 %1135  ;;  %v1130_v4 = vpop.xlane.xlu0 %1129 }
 0x3ee   : > { %v1176_v7 = vsub.f32 %v3405_v33, %v1136_v3  ;;  %v1091_v49 = vpop.xlane.xlu1 %1090  ;;  %v1174_v9 = vsub.f32 %v3395_v25, %v1130_v4  ;;  %v1550_v25 = vmax.f32 %v1464_v6, 0.0  ;;  %v1551_v33 = vmax.f32 %v1513_v11, 0.0 }
 0x3ef   : > { %3066 = vrcp.f32 %v1091_v49 }
 0x3f0   : > { %v3836_v5 = vpop.eup %3062  ;;  %v1195_v13 = vmul.f32 1.442695, %v1176_v7  ;;  %v1191_v14 = vmul.f32 1.442695, %v1174_v9  ;;  %v1465_v15 = vpop.f32.mrf.mxu0 }
 0x3f1   : > { %v1514_v18 = vpop.f32.mrf.mxu1  ;;  %v3065_v0 = vpop.eup %3064  ;;  %v1466_v59 = vadd.f32 %v1465_v15, %v3761_v24  ;;  %1237 = vrot.lane.b32.xlu0 %v3836_v5, %s3170_s20 }
 0x3f2   : > { %v1515_v19 = vadd.f32 %v1514_v18, %v3763_v26  ;;  %3068 = vpow2.f32 %v1195_v13  ;;  %v1122_v27 = vmul.f32 %v3065_v0, %v3589_v50 }
 0x3f3   : > { %3070 = vpow2.f32 %v1191_v14  ;;  %v1552_v21 = vmax.f32 %v1466_v59, 0.0 }
 0x3f4   : > { %v1553_v42 = vmax.f32 %v1515_v19, 0.0  ;;  %v1380_v41 = vmul.f32 %v1122_v27, %v443_v39 }
 0x3f5   : > { %v3067_v29 = vpop.eup %3066  ;;  %v1145_v34 = vpop.xlane.xlu2 %1144  ;;  %v3845_v38 = vpack.c.bf16 %v1552_v21, %v1550_v25 }
 0x3f6   : > { %v3843_v31 = vpack.c.bf16 %v1553_v42, %v1551_v33  ;;  %v1139_v37 = vpop.xlane.xlu0 %1138  ;;  %v1123_v47 = vmul.f32 %v3067_v29, %v3608_v12  ;;  %v1179_v48 = vsub.f32 %v3420_v40, %v1145_v34  ;;  %v1133_v23 = vpop.xlane.xlu1 %1132 }
 0x3f7   : > { %v1175_v54 = vsub.f32 %v3400_v28, %v1133_v23  ;;  %1796 = vmatmul.bf16.gmra.mxu3 %v3845_v38  ;;  %v1177_v12 = vsub.f32 %v3410_v36, %v1139_v37 }
 0x3f8   : > { %2841 = vmatmul.msk.bf16.gmra.mxu2 %vm1746_vm5, %v3843_v31  ;;  %v3855_v50 = vpop.eup %3068  ;;  %v1201_v61 = vmul.f32 1.442695, %v1179_v48  ;;  %v1468_v51 = vpop.f32.mrf.mxu0  ;;  %v1381_v53 = vmul.f32 %v1123_v47, %v444_v44 }
 0x3f9   : > { %v3857_v22 = vpop.eup %3070  ;;  %v1193_v56 = vmul.f32 1.442695, %v1175_v54  ;;  %v1517_v40 = vpop.f32.mrf.mxu1  ;;  %1243 = vrot.lane.b32.xlu0 %v3855_v50, %s3170_s20  ;;  %v1197_v62 = vmul.f32 1.442695, %v1177_v12  ;;  %v1469_v8 = vadd.f32 %v1468_v51, %v3761_v24 }
 0x3fa   : > { %3072 = vpow2.f32 %v1201_v61  ;;  %1239 = vrot.lane.b32.xlu1 %v3857_v22, %s3170_s20  ;;  %v1389_v28 = vpack.c.bf16 %v1381_v53, %v1380_v41  ;;  %v1518_v4 = vadd.f32 %v1517_v40, %v3763_v26 }
 0x3fb   : > { %3074 = vpow2.f32 %v1193_v56  ;;  %v1554_v14 = vmax.f32 %v1469_v8, 0.0 }
 0x3fc   : > { %2734 = vmatmul.msk.bf16.gmra.mxu0 %vm947_vm2, %v1389_v28  ;;  %2742 = vmatmul.msk.bf16.gmra.mxu1 %vm947_vm2, %v1389_v28  ;;  %3076 = vpow2.f32 %v1197_v62  ;;  %v1555_v18 = vmax.f32 %v1518_v4, 0.0 }
 0x3fd   : > { %v1154_v52 = vpop.xlane.xlu2 %1153 }
 0x3fe   : > { %v1148_v63 = vpop.xlane.xlu0 %1147  ;;  %v1182_v20 = vsub.f32 %v3441_v58, %v1154_v52  ;;  %v1142_v36 = vpop.xlane.xlu1 %1141 }
 0x3ff   : > { %v1178_v1 = vsub.f32 %v3415_v30, %v1142_v36  ;;  %v1180_v11 = vsub.f32 %v3425_v43, %v1148_v63 }
 0x400   : > { %v3869_v3 = vpop.eup %3072  ;;  %v1207_v6 = vmul.f32 1.442695, %v1182_v20  ;;  %v1470_v7 = vpop.f32.mrf.mxu0 }
 0x401   : > { %v3872_v49 = vpop.eup %3074  ;;  %v1199_v9 = vmul.f32 1.442695, %v1178_v1  ;;  %v1471_v13 = vadd.f32 %v1470_v7, %v3761_v24  ;;  %v1519_v58 = vpop.f32.mrf.mxu1  ;;  %1249 = vrot.lane.b32.xlu0 %v3869_v3, %s3170_s20  ;;  %v1203_v59 = vmul.f32 1.442695, %v1180_v11  ;;  %v2973_v11 = vld [vmem:[%s4267_s8 + $0x18] sm:$0xff] }
 0x402   : > { %3078 = vpow2.f32 %v1207_v6  ;;  %v1520_v30 = vadd.f32 %v1519_v58, %v3763_v26  ;;  %1241 = vrot.lane.b32.xlu2 %v3872_v49, %s3170_s20  ;;  %v3886_v27 = vpop.eup %3076  ;;  %v2980_v6 = vld [vmem:[%s4267_s8 + $0x50] sm:$0xff] }
 0x403   : > { %3080 = vpow2.f32 %v1199_v9  ;;  %v1556_v15 = vmax.f32 %v1471_v13, 0.0 }
 0x404   : > { %v1557_v0 = vmax.f32 %v1520_v30, 0.0  ;;  %3082 = vpow2.f32 %v1203_v59 }
 0x405   : > { %v1163_v19 = vpop.xlane.xlu2 %1162  ;;  %v3881_v25 = vpack.c.bf16 %v1556_v15, %v1554_v14 }
 0x406   : > { %v1157_v43 = vpop.xlane.xlu0 %1156  ;;  %v3883_v33 = vpack.c.bf16 %v1557_v0, %v1555_v18  ;;  %v1185_v21 = vsub.f32 %v3471_v17, %v1163_v19  ;;  %v1151_v42 = vpop.xlane.xlu1 %1150 }
 0x407   : > { %v1181_v29 = vsub.f32 %v3430_v46, %v1151_v42  ;;  %1801 = vmatmul.bf16.gmra.mxu3 %v3881_v25  ;;  %v1183_v47 = vsub.f32 %v3451_v2, %v1157_v43  ;;  %v2977_v46 = vld [vmem:[%s4267_s8 + $0x38] sm:$0xff]  ;;  %v2046_v2 = vld [vmem:[%s4267_s8 + $0x60] sm:$0xf] }
 0x408   : > { %v3890_v34 = vpop.eup %3078  ;;  %v1213_v37 = vmul.f32 1.442695, %v1185_v21  ;;  %2842 = vmatmul.msk.bf16.gmra.mxu2 %vm1746_vm5, %v3883_v33  ;;  %v2100_v23 = vunpack.c.l.b16 %v2046_v2  ;;  %2153 = vmatpush.bf16.msrb.mxu3 %v2977_v46 }
 0x409   : > { %v3894_v39 = vpop.eup %3080  ;;  %v1205_v44 = vmul.f32 1.442695, %v1181_v29  ;;  %1255 = vrot.lane.b32.xlu0 %v3890_v34, %s3170_s20  ;;  %v1209_v17 = vmul.f32 1.442695, %v1183_v47  ;;  %v2972_v47 = vld [vmem:[%s4267_s8 + $0x10] sm:$0xff] }
 0x40a   : > { %3084 = vpow2.f32 %v1213_v37  ;;  %1247 = vrot.lane.b32.xlu1 %v3894_v39, %s3170_s20  ;;  %1245 = vrot.lane.b32.xlu2 %v3886_v27, %s3170_s20  ;;  %v3913_v51 = vpop.eup %3082  ;;  %v2113_v41 = vpack.c.b16 %v2100_v23, %v2100_v23 }
 0x40b   : > { %3086 = vpow2.f32 %v1205_v44  ;;  %v2979_v44 = vld [vmem:[%s4267_s8 + $0x48] sm:$0xff] }
 0x40c   : > { %1884 = vmatmul.bf16.vlgmr.msra.gmra.mxu0 %v3775_v57  ;;  %2847 = vmatmul.msk.bf16.vlgmr.msrb.gmra.mxu1 %vm1746_vm5, %v3777_v60  ;;  %3088 = vpow2.f32 %v1209_v17 }
 0x40d   : > { %v1172_v48 = vpop.xlane.xlu2 %1171 }
 0x40e   : > { %v1188_v54 = vsub.f32 %v3507_v55, %v1172_v48  ;;  %v1160_v61 = vpop.xlane.xlu1 %1159  ;;  %v1166_v60 = vpop.xlane.xlu0 %1165  ;;  %v2151_v55 = vsel %vm1771_vm4, %v2113_v41, 0 }
 0x40f   : > { %v1184_v57 = vsub.f32 %v3461_v10, %v1160_v61  ;;  %v1186_v28 = vsub.f32 %v3487_v35, %v1166_v60  ;;  %2205 = vmatpush.bf16.msrb.mxu2 %v2151_v55  ;;  %v2976_v35 = vld [vmem:[%s4267_s8 + $0x30] sm:$0xff] }
 0x410   : > { %v3916_v53 = vpop.eup %3084  ;;  %v1219_v56 = vmul.f32 1.442695, %v1188_v54  ;;  %2154 = vmatpush.bf16.msrb.mxu3 %v2976_v35 }
 0x411   : > { %v3918_v12 = vpop.eup %3086  ;;  %v1211_v40 = vmul.f32 1.442695, %v1184_v57  ;;  %1261 = vrot.lane.b32.xlu0 %v3916_v53, %s3170_s20  ;;  %v1215_v10 = vmul.f32 1.442695, %v1186_v28 }
 0x412   : > { %3090 = vpow2.f32 %v1219_v56  ;;  %1253 = vrot.lane.b32.xlu1 %v3918_v12, %s3170_s20  ;;  %1251 = vrot.lane.b32.xlu2 %v3913_v51, %s3170_s20  ;;  %v3928_v52 = vpop.eup %3088 }
 0x413   : > { %3092 = vpow2.f32 %v1211_v40 }
 0x414   : > { %3094 = vpow2.f32 %v1215_v10 }
 0x416   : > { %v1169_v62 = vpop.xlane.xlu1 %1168 }
 0x417   : > { %v1187_v63 = vsub.f32 %v3497_v45, %v1169_v62  ;;  %v2981_v45 = vld [vmem:[%s4267_s8 + $0x58] sm:$0xff] }
 0x418   : > { %v3931_v20 = vpop.eup %3090  ;;  %2206 = vmatpush.bf16.msrb.mxu2 %v2981_v45 }
 0x419   : > { %v3933_v36 = vpop.eup %3092  ;;  %v1217_v8 = vmul.f32 1.442695, %v1187_v63  ;;  %1267 = vrot.lane.b32.xlu0 %v3931_v20, %s3170_s20 }
 0x41a   : > { %1259 = vrot.lane.b32.xlu1 %v3933_v36, %s3170_s20  ;;  %1257 = vrot.lane.b32.xlu2 %v3928_v52, %s3170_s20  ;;  %v3950_v1 = vpop.eup %3094 }
 0x41b   : > { %3096 = vpow2.f32 %v1217_v8 }
 0x41c   : > { %1889 = vmatmul.bf16.gmra.mxu0 %v3810_v32  ;;  %2848 = vmatmul.msk.bf16.gmra.mxu1 %vm1746_vm5, %v3812_v16  ;;  %v2975_v32 = vld [vmem:[%s4267_s8 + $0x28] sm:$0xff]  ;;  %v2974_v16 = vld [vmem:[%s4267_s8 + $0x20] sm:$0xff] }
 0x41d   : > { %2155 = vmatpush.bf16.msrb.mxu3 %v2975_v32  ;;  %2207 = vmatpush.bf16.msrb.mxu2 %v2980_v6  ;;  %v2971_v6 = vld [vmem:[%s4267_s8 + $0x8] sm:$0xff] }
 0x421   : > { %v3952_v4 = vpop.eup %3096  ;;  %2156 = vmatpush.bf16.msrb.mxu3 %v2974_v16  ;;  %2208 = vmatpush.bf16.msrb.mxu2 %v2979_v44 }
 0x422   : > { %1265 = vrot.lane.b32.xlu1 %v3952_v4, %s3170_s20  ;;  %1263 = vrot.lane.b32.xlu2 %v3950_v1, %s3170_s20 }
 0x425   : > { %2157 = vmatpush.bf16.msrb.mxu3 %v2973_v11 }
 0x429   : > { %2158 = vmatpush.bf16.msrb.mxu3 %v2972_v47 }
 0x42c   : > { %1894 = vmatmul.bf16.gmra.mxu0 %v3845_v38  ;;  %2849 = vmatmul.msk.bf16.gmra.mxu1 %vm1746_vm5, %v3843_v31 }
 0x42d   : > { %2159 = vmatpush.bf16.msrb.mxu3 %v2971_v6 }
 0x43c   : > { %1899 = vmatmul.bf16.gmra.mxu0 %v3881_v25  ;;  %2850 = vmatmul.msk.bf16.gmra.mxu1 %vm1746_vm5, %v3883_v33 }
 0x448   : > { %v1473_v38 = vpop.f32.mrf.mxu0  ;;  %v1522_v7 = vpop.f32.mrf.mxu1 }
 0x449   : > { %v1474_v31 = vadd.f32 %v1473_v38, %v3761_v24  ;;  %v1523_v9 = vadd.f32 %v1522_v7, %v3763_v26 }
 0x44b   : > { %v1558_v15 = vmax.f32 %v1474_v31, 0.0  ;;  %v1559_v18 = vmax.f32 %v1523_v9, 0.0 }
 0x450   : > { %v1475_v13 = vpop.f32.mrf.mxu0  ;;  %v1524_v58 = vpop.f32.mrf.mxu1 }
 0x451   : > { %v1476_v30 = vadd.f32 %v1475_v13, %v3761_v24  ;;  %v1525_v14 = vadd.f32 %v1524_v58, %v3763_v26 }
 0x453   : > { %v1560_v0 = vmax.f32 %v1476_v30, 0.0  ;;  %v1561_v59 = vmax.f32 %v1525_v14, 0.0 }
 0x455   : > { %v1583_v19 = vpack.c.bf16 %v1561_v59, %v1559_v18  ;;  %v1582_v43 = vpack.c.bf16 %v1560_v0, %v1558_v15  ;;  %v2970_v18 = vld [vmem:[%s4267_s8] sm:$0xff] }
 0x456   : > { %2160 = vmatpush.bf16.msrb.mxu3 %v2970_v18 }
 0x457   : > { %1806 = vmatmul.bf16.gmra.mxu3 %v1582_v43  ;;  %2843 = vmatmul.msk.bf16.gmra.mxu2 %vm1746_vm5, %v1583_v19 }
 0x458   : > { %1904 = vmatmul.bf16.gmra.mxu0 %v1582_v43  ;;  %2851 = vmatmul.msk.bf16.gmra.mxu1 %vm1746_vm5, %v1583_v19  ;;  %v1478_v25 = vpop.f32.mrf.mxu0  ;;  %v1527_v33 = vpop.f32.mrf.mxu1 }
 0x459   : > { %v1479_v29 = vadd.f32 %v1478_v25, %v3761_v24  ;;  %v1528_v37 = vadd.f32 %v1527_v33, %v3763_v26  ;;  %v2978_v33 = vld [vmem:[%s4267_s8 + $0x40] sm:$0xff] }
 0x45a   : > { %v3998_v45 = vpop.f32.mrf.mxu3  ;;  %v4012_v43 = vpop.f32.mrf.mxu2  ;;  %2209 = vmatpush.bf16.msrb.mxu2 %v2978_v33 }
 0x45b   : > { %v1562_v23 = vmax.f32 %v1479_v29, 0.0  ;;  %v1563_v54 = vmax.f32 %v1528_v37, 0.0 }
 0x45c   : > { %v1242_v21 = vpop.permute.xlu2 %1241 }
 0x45d   : > { %v1292_v42 = vsel %vm1285_vm6, %v1242_v21, 0.0 }
 0x45e   : > { %1293 = vadd.xlane.f32.xlu0 %v1292_v42 }
 0x460   : > { %v1480_v46 = vpop.f32.mrf.mxu0  ;;  %v1529_v2 = vpop.f32.mrf.mxu1 }
 0x461   : > { %v1481_v17 = vadd.f32 %v1480_v46, %v3761_v24  ;;  %v1530_v48 = vadd.f32 %v1529_v2, %v3763_v26 }
 0x462   : > { %v1789_v29 = vpop.f32.mrf.mxu3 }
 0x463   : > { %v1564_v61 = vmax.f32 %v1481_v17, 0.0  ;;  %v1565_v57 = vmax.f32 %v1530_v48, 0.0  ;;  %v1238_v60 = vpop.permute.xlu0 %1237  ;;  %v1838_v48 = vpop.f32.mrf.mxu2 }
 0x464   : > { %v1286_v41 = vsel %vm1285_vm6, %v1238_v60, 0.0  ;;  %v1246_v62 = vpop.permute.xlu2 %1245 }
 0x465   : > { %v1585_v56 = vpack.c.bf16 %v1565_v57, %v1563_v54  ;;  %1287 = vadd.xlane.f32.xlu2 %v1286_v41  ;;  %v1584_v40 = vpack.c.bf16 %v1564_v61, %v1562_v23  ;;  %v1298_v59 = vsel %vm1285_vm6, %v1246_v62, 0.0 }
 0x467   : > { %1811 = vmatmul.bf16.gmra.mxu3 %v1584_v40  ;;  %2844 = vmatmul.msk.bf16.gmra.mxu2 %vm1746_vm5, %v1585_v56 }
 0x468   : > { %1909 = vmatmul.bf16.gmra.mxu0 %v1584_v40  ;;  %2852 = vmatmul.msk.bf16.gmra.mxu1 %vm1746_vm5, %v1585_v56  ;;  %v1483_v55 = vpop.f32.mrf.mxu0  ;;  %v1532_v28 = vpop.f32.mrf.mxu1 }
 0x469   : > { %v1484_v32 = vadd.f32 %v1483_v55, %v3761_v24  ;;  %v1533_v16 = vadd.f32 %v1532_v28, %v3763_v26 }
 0x46a   : > { %v1792_v55 = vpop.f32.mrf.mxu3 }
 0x46b   : > { %v1244_v10 = vpop.permute.xlu0 %1243  ;;  %v1566_v11 = vmax.f32 %v1484_v32, 0.0  ;;  %v1567_v13 = vmax.f32 %v1533_v16, 0.0 }
 0x46c   : > { %v1240_v63 = vpop.permute.xlu1 %1239  ;;  %v1295_v8 = vsel %vm1285_vm6, %v1244_v10, 0.0  ;;  %v1252_v25 = vpop.permute.xlu2 %1251 }
 0x46d   : > { %v1289_v35 = vsel %vm1285_vm6, %v1240_v63, 0.0  ;;  %1296 = vadd.xlane.f32.xlu2 %v1295_v8  ;;  %v1307_v2 = vsel %vm1285_vm6, %v1252_v25, 0.0 }
 0x46e   : > { %1290 = vadd.xlane.f32.xlu1 %v1289_v35  ;;  %v1615_v35 = vld [vmem:[%s4269_s10 + $0x6] sm:$0x3] }
 0x46f   : > { %v4032_v6 = vperm.slane %v1615_v35, 0 }
 0x470   : > { %v1485_v38 = vpop.f32.mrf.mxu0  ;;  %v1534_v7 = vpop.f32.mrf.mxu1 }
 0x471   : > { %v1486_v31 = vadd.f32 %v1485_v38, %v3761_v24  ;;  %v1535_v9 = vadd.f32 %v1534_v7, %v3763_v26 }
 0x473   : > { %v1568_v58 = vmax.f32 %v1486_v31, 0.0  ;;  %v1569_v30 = vmax.f32 %v1535_v9, 0.0  ;;  %v1250_v14 = vpop.permute.xlu0 %1249  ;;  %v1790_v31 = vadd.f32 %v1789_v29, %v4032_v6  ;;  %v1841_v9 = vpop.f32.mrf.mxu2 }
 0x474   : > { %v1304_v15 = vsel %vm1285_vm6, %v1250_v14, 0.0  ;;  %v1258_v23 = vpop.permute.xlu2 %1257 }
 0x475   : > { %v1587_v0 = vpack.c.bf16 %v1569_v30, %v1567_v13  ;;  %1305 = vadd.xlane.f32.xlu2 %v1304_v15  ;;  %v1586_v19 = vpack.c.bf16 %v1568_v58, %v1566_v11  ;;  %v1316_v16 = vsel %vm1285_vm6, %v1258_v23, 0.0  ;;  %v4037_v13 = vperm.slane %v1615_v35, 1 }
 0x476   : > { %1299 = vadd.xlane.f32.xlu1 %v1298_v59  ;;  %v1788_v30 = vadd.f32 %v3998_v45, %v4032_v6  ;;  %v1839_v59 = vadd.f32 %v1838_v48, %v1790_v31 }
 0x477   : > { %1816 = vmatmul.bf16.gmra.mxu3 %v1586_v19  ;;  %2845 = vmatmul.msk.bf16.gmra.mxu2 %vm1746_vm5, %v1587_v0 }
 0x478   : > { %1914 = vmatmul.bf16.gmra.mxu0 %v1586_v19  ;;  %2853 = vmatmul.msk.bf16.gmra.mxu1 %vm1746_vm5, %v1587_v0  ;;  %v1794_v19 = vpop.f32.mrf.mxu3  ;;  %v1837_v33 = vadd.f32 %v4012_v43, %v1788_v30  ;;  %v1976_v29 = vmax.f32 %v1839_v59, 0.0 }
 0x479   : > { %v1488_v21 = vpop.f32.mrf.mxu0  ;;  %v1537_v42 = vpop.f32.mrf.mxu1 }
 0x47a   : > { %v1489_v17 = vadd.f32 %v1488_v21, %v3761_v24  ;;  %v1538_v54 = vadd.f32 %v1537_v42, %v3763_v26 }
 0x47b   : > { %v1256_v37 = vpop.permute.xlu0 %1255 }
 0x47c   : > { %v1248_v44 = vpop.permute.xlu1 %1247  ;;  %v1313_v47 = vsel %vm1285_vm6, %v1256_v37, 0.0  ;;  %v1570_v56 = vmax.f32 %v1489_v17, 0.0  ;;  %v1571_v28 = vmax.f32 %v1538_v54, 0.0  ;;  %v1264_v11 = vpop.permute.xlu2 %1263 }
 0x47d   : > { %v1301_v46 = vsel %vm1285_vm6, %v1248_v44, 0.0  ;;  %1314 = vadd.xlane.f32.xlu2 %v1313_v47  ;;  %v1325_v0 = vsel %vm1285_vm6, %v1264_v11, 0.0  ;;  %v1974_v44 = vmax.f32 %v1837_v33, 0.0  ;;  %v1843_v47 = vpop.f32.mrf.mxu2 }
 0x47e   : > { %1302 = vadd.xlane.f32.xlu0 %v1301_v46  ;;  %1308 = vadd.xlane.f32.xlu1 %v1307_v2 }
 0x47f   : > { %v2006_v48 = vpack.c.bf16 %v1976_v29, %v1974_v44 }
 0x481   : > { %v1490_v61 = vpop.f32.mrf.mxu0  ;;  %v1539_v57 = vpop.f32.mrf.mxu1 }
 0x482   : > { %v1491_v60 = vadd.f32 %v1490_v61, %v3761_v24  ;;  %v1540_v41 = vadd.f32 %v1539_v57, %v3763_v26  ;;  %v1797_v61 = vpop.f32.mrf.mxu3 }
 0x483   : > { %v1262_v40 = vpop.permute.xlu0 %1261 }
 0x484   : > { %v1572_v10 = vmax.f32 %v1491_v60, 0.0  ;;  %v1573_v62 = vmax.f32 %v1540_v41, 0.0  ;;  %v1254_v63 = vpop.permute.xlu1 %1253  ;;  %v1322_v8 = vsel %vm1285_vm6, %v1262_v40, 0.0  ;;  %v1795_v41 = vadd.f32 %v1794_v19, %v4032_v6 }
 0x485   : > { %v1310_v32 = vsel %vm1285_vm6, %v1254_v63, 0.0  ;;  %1323 = vadd.xlane.f32.xlu2 %v1322_v8  ;;  %v2982_v63 = vld [vmem:[%s4268_s9] sm:$0x10]  ;;  %v1798_v19 = vadd.f32 %v1797_v61, %v4032_v6 }
 0x486   : > { %v1589_v24 = vpack.c.bf16 %v1573_v62, %v1571_v28  ;;  %1311 = vadd.xlane.f32.xlu0 %v1310_v32  ;;  %1317 = vadd.xlane.f32.xlu1 %v1316_v16  ;;  %v1588_v26 = vpack.c.bf16 %v1572_v10, %v1570_v56  ;;  %v1793_v56 = vadd.f32 %v1792_v55, %v4032_v6  ;;  %v1846_v28 = vpop.f32.mrf.mxu2  ;;  %v2913_v62 = vld [vmem:[%s4268_s9] sm:$0xf] }
 0x487   : > { %v1844_v40 = vadd.f32 %v1843_v47, %v1795_v41  ;;  %v2914_v8 = vor.u32 %v2982_v63, %v2913_v62 }
 0x488   : > { %1821 = vmatmul.bf16.gmra.mxu3 %v1588_v26  ;;  %2846 = vmatmul.msk.bf16.gmra.mxu2 %vm1746_vm5, %v1589_v24  ;;  %v1842_v35 = vadd.f32 %v1841_v9, %v1793_v56 }
 0x489   : > { %1919 = vmatmul.bf16.gmra.mxu0 %v1588_v26  ;;  %2854 = vmatmul.msk.bf16.gmra.mxu1 %vm1746_vm5, %v1589_v24  ;;  %v1885_v38 = vpop.f32.mrf.mxu0  ;;  %v1934_v7 = vpop.f32.mrf.mxu1  ;;  %v2313_v24 = vsel %vm2311_vm7, %v2914_v8, 0  ;;  %v1980_v26 = vmax.f32 %v1844_v40, 0.0 }
 0x48a   : > { %v1886_v25 = vadd.f32 %v1885_v38, %v4037_v13  ;;  %2322 = vmatpush.bf16.msrb.mxu0 %v2313_v24  ;;  %v1978_v31 = vmax.f32 %v1842_v35, 0.0 }
 0x48b   : > { %v1268_v58 = vpop.permute.xlu0 %1267 }
 0x48c   : > { %v1260_v14 = vpop.permute.xlu1 %1259  ;;  %v1331_v15 = vsel %vm1285_vm6, %v1268_v58, 0.0  ;;  %v1935_v45 = vadd.f32 %v1934_v7, %v1886_v25  ;;  %v1799_v7 = vpop.f32.mrf.mxu3 }
 0x48d   : > { %v1319_v18 = vsel %vm1285_vm6, %v1260_v14, 0.0  ;;  %1332 = vadd.xlane.f32.xlu2 %v1331_v15  ;;  %v2008_v14 = vpack.c.bf16 %v1980_v26, %v1978_v31  ;;  %v1800_v9 = vadd.f32 %v1799_v7, %v4032_v6 }
 0x48e   : > { %1320 = vadd.xlane.f32.xlu0 %v1319_v18  ;;  %1326 = vadd.xlane.f32.xlu1 %v1325_v0  ;;  %v1975_v23 = vmax.f32 %v1935_v45, 0.0  ;;  %v1848_v15 = vpop.f32.mrf.mxu2 }
 0x48f   : > { %v1849_v33 = vadd.f32 %v1848_v15, %v1800_v9 }
 0x491   : > { %v1887_v21 = vpop.f32.mrf.mxu0  ;;  %v1936_v42 = vpop.f32.mrf.mxu1 }
 0x492   : > { %v1888_v37 = vadd.f32 %v1887_v21, %v4037_v13 }
 0x494   : > { %v1937_v46 = vadd.f32 %v1936_v42, %v1888_v37  ;;  %v1266_v2 = vpop.permute.xlu1 %1265  ;;  %v1802_v25 = vpop.f32.mrf.mxu3  ;;  %v1847_v42 = vadd.f32 %v1846_v28, %v1798_v19  ;;  %v1984_v37 = vmax.f32 %v1849_v33, 0.0 }
 0x495   : > { %v1328_v17 = vsel %vm1285_vm6, %v1266_v2, 0.0  ;;  %v1803_v56 = vadd.f32 %v1802_v25, %v4032_v6 }
 0x496   : > { %v1977_v54 = vmax.f32 %v1937_v46, 0.0  ;;  %1329 = vadd.xlane.f32.xlu0 %v1328_v17  ;;  %v1851_v46 = vpop.f32.mrf.mxu2  ;;  %v1982_v2 = vmax.f32 %v1847_v42, 0.0 }
 0x497   : > { %v1852_v62 = vadd.f32 %v1851_v46, %v1803_v56 }
 0x498   : > { %v2007_v57 = vpack.c.bf16 %v1977_v54, %v1975_v23  ;;  %2161 = vmatmul.bf16.vlgmr.msrb.gmra.mxu3 %v2006_v48  ;;  %v2010_v54 = vpack.c.bf16 %v1984_v37, %v1982_v2 }
 0x499   : > { %v1890_v43 = vpop.f32.mrf.mxu0  ;;  %v1939_v60 = vpop.f32.mrf.mxu1  ;;  %v1986_v24 = vmax.f32 %v1852_v62, 0.0 }
 0x49a   : > { %2903 = vmatmul.msk.bf16.vlgmr.msrb.gmra.mxu2 %vm1746_vm5, %v2007_v57  ;;  %v1891_v10 = vadd.f32 %v1890_v43, %v4037_v13 }
 0x49c   : > { %v1940_v55 = vadd.f32 %v1939_v60, %v1891_v10  ;;  %v1804_v57 = vpop.f32.mrf.mxu3 }
 0x49d   : > { %v1805_v41 = vadd.f32 %v1804_v57, %v4032_v6 }
 0x49e   : > { %v1979_v58 = vmax.f32 %v1940_v55, 0.0  ;;  %v1853_v40 = vpop.f32.mrf.mxu2 }
 0x49f   : > { %v1854_v28 = vadd.f32 %v1853_v40, %v1805_v41 }
 0x4a1   : > { %v1892_v32 = vpop.f32.mrf.mxu0  ;;  %v1941_v16 = vpop.f32.mrf.mxu1  ;;  %v1988_v8 = vmax.f32 %v1854_v28, 0.0 }
 0x4a2   : > { %v1893_v38 = vadd.f32 %v1892_v32, %v4037_v13 }
 0x4a3   : > { %v2012_v7 = vpack.c.bf16 %v1988_v8, %v1986_v24 }
 0x4a4   : > { %v1942_v11 = vadd.f32 %v1941_v16, %v1893_v38 }
 0x4a6   : > { %v1981_v30 = vmax.f32 %v1942_v11, 0.0 }
 0x4a8   : > { %v2009_v18 = vpack.c.bf16 %v1981_v30, %v1979_v58  ;;  %2166 = vmatmul.bf16.gmra.mxu3 %v2008_v14 }
 0x4a9   : > { %v1895_v0 = vpop.f32.mrf.mxu0  ;;  %v1944_v59 = vpop.f32.mrf.mxu1 }
 0x4aa   : > { %2904 = vmatmul.msk.bf16.gmra.mxu2 %vm1746_vm5, %v2009_v18  ;;  %v1896_v21 = vadd.f32 %v1895_v0, %v4037_v13 }
 0x4ac   : > { %v1945_v44 = vadd.f32 %v1944_v59, %v1896_v21 }
 0x4ae   : > { %v1983_v48 = vmax.f32 %v1945_v44, 0.0 }
 0x4b1   : > { %v1897_v29 = vpop.f32.mrf.mxu0  ;;  %v1946_v45 = vpop.f32.mrf.mxu1 }
 0x4b2   : > { %v1898_v47 = vadd.f32 %v1897_v29, %v4037_v13 }
 0x4b4   : > { %v1947_v17 = vadd.f32 %v1946_v45, %v1898_v47 }
 0x4b6   : > { %v1985_v23 = vmax.f32 %v1947_v17, 0.0 }
 0x4b8   : > { %v2011_v43 = vpack.c.bf16 %v1985_v23, %v1983_v48  ;;  %2171 = vmatmul.bf16.gmra.mxu3 %v2010_v54 }
 0x4b9   : > { %v1900_v61 = vpop.f32.mrf.mxu0  ;;  %v1949_v60 = vpop.f32.mrf.mxu1 }
 0x4ba   : > { %2905 = vmatmul.msk.bf16.gmra.mxu2 %vm1746_vm5, %v2011_v43  ;;  %v1901_v10 = vadd.f32 %v1900_v61, %v4037_v13 }
 0x4bc   : > { %v1950_v35 = vadd.f32 %v1949_v60, %v1901_v10 }
 0x4be   : > { %v1987_v55 = vmax.f32 %v1950_v35, 0.0 }
 0x4c1   : > { %v1902_v63 = vpop.f32.mrf.mxu0  ;;  %v1951_v16 = vpop.f32.mrf.mxu1 }
 0x4c2   : > { %v1903_v32 = vadd.f32 %v1902_v63, %v4037_v13 }
 0x4c4   : > { %v1952_v26 = vadd.f32 %v1951_v16, %v1903_v32 }
 0x4c6   : > { %v1989_v38 = vmax.f32 %v1952_v26, 0.0 }
 0x4c8   : > { %v2013_v31 = vpack.c.bf16 %v1989_v38, %v1987_v55  ;;  %2176 = vmatmul.bf16.gmra.mxu3 %v2012_v7 }
 0x4ca   : > { %2906 = vmatmul.msk.bf16.gmra.mxu2 %vm1746_vm5, %v2013_v31 }
 0x4d5   : > { %v1905_v11 = vpop.f32.mrf.mxu0  ;;  %v1954_v58 = vpop.f32.mrf.mxu1 }
 0x4d6   : > { %v1906_v30 = vadd.f32 %v1905_v11, %v4037_v13 }
 0x4d8   : > { %v1955_v59 = vadd.f32 %v1954_v58, %v1906_v30 }
 0x4da   : > { %v1807_v14 = vpop.f32.mrf.mxu3  ;;  %v1856_v15 = vpop.f32.mrf.mxu2  ;;  %v1991_v33 = vmax.f32 %v1955_v59, 0.0 }
 0x4db   : > { %v1808_v19 = vadd.f32 %v1807_v14, %v4032_v6 }
 0x4dd   : > { %v1907_v18 = vpop.f32.mrf.mxu0  ;;  %v1956_v0 = vpop.f32.mrf.mxu1  ;;  %v1857_v45 = vadd.f32 %v1856_v15, %v1808_v19 }
 0x4de   : > { %v1908_v9 = vadd.f32 %v1907_v18, %v4037_v13 }
 0x4df   : > { %v1990_v17 = vmax.f32 %v1857_v45, 0.0 }
 0x4e0   : > { %v1957_v25 = vadd.f32 %v1956_v0, %v1908_v9 }
 0x4e2   : > { %v1993_v21 = vmax.f32 %v1957_v25, 0.0  ;;  %v1809_v42 = vpop.f32.mrf.mxu3  ;;  %v1858_v29 = vpop.f32.mrf.mxu2 }
 0x4e3   : > { %v1810_v37 = vadd.f32 %v1809_v42, %v4032_v6 }
 0x4e4   : > { %v2015_v44 = vpack.c.bf16 %v1993_v21, %v1991_v33 }
 0x4e5   : > { %v1859_v47 = vadd.f32 %v1858_v29, %v1810_v37  ;;  %v1910_v46 = vpop.f32.mrf.mxu0  ;;  %v1959_v2 = vpop.f32.mrf.mxu1 }
 0x4e6   : > { %2907 = vmatmul.msk.bf16.gmra.mxu2 %vm1746_vm5, %v2015_v44  ;;  %v1911_v54 = vadd.f32 %v1910_v46, %v4037_v13 }
 0x4e7   : > { %v1992_v48 = vmax.f32 %v1859_v47, 0.0 }
 0x4e8   : > { %v1960_v41 = vadd.f32 %v1959_v2, %v1911_v54 }
 0x4e9   : > { %v2014_v23 = vpack.c.bf16 %v1992_v48, %v1990_v17 }
 0x4ea   : > { %v1812_v57 = vpop.f32.mrf.mxu3  ;;  %v1861_v43 = vpop.f32.mrf.mxu2  ;;  %v1995_v10 = vmax.f32 %v1960_v41, 0.0 }
 0x4eb   : > { %2181 = vmatmul.bf16.gmra.mxu3 %v2014_v23  ;;  %v1813_v40 = vadd.f32 %v1812_v57, %v4032_v6 }
 0x4ed   : > { %v1912_v61 = vpop.f32.mrf.mxu0  ;;  %v1961_v60 = vpop.f32.mrf.mxu1  ;;  %v1862_v35 = vadd.f32 %v1861_v43, %v1813_v40 }
 0x4ee   : > { %v1913_v56 = vadd.f32 %v1912_v61, %v4037_v13 }
 0x4ef   : > { %v1994_v38 = vmax.f32 %v1862_v35, 0.0 }
 0x4f0   : > { %v1962_v28 = vadd.f32 %v1961_v60, %v1913_v56 }
 0x4f2   : > { %v1997_v62 = vmax.f32 %v1962_v28, 0.0  ;;  %v1814_v63 = vpop.f32.mrf.mxu3  ;;  %v1863_v8 = vpop.f32.mrf.mxu2 }
 0x4f3   : > { %v1815_v32 = vadd.f32 %v1814_v63, %v4032_v6 }
 0x4f4   : > { %v2017_v16 = vpack.c.bf16 %v1997_v62, %v1995_v10 }
 0x4f5   : > { %v1864_v24 = vadd.f32 %v1863_v8, %v1815_v32  ;;  %v1915_v26 = vpop.f32.mrf.mxu0  ;;  %v1964_v55 = vpop.f32.mrf.mxu1 }
 0x4f6   : > { %2908 = vmatmul.msk.bf16.gmra.mxu2 %vm1746_vm5, %v2017_v16  ;;  %v1916_v11 = vadd.f32 %v1915_v26, %v4037_v13 }
 0x4f7   : > { %v1996_v7 = vmax.f32 %v1864_v24, 0.0 }
 0x4f8   : > { %v1965_v18 = vadd.f32 %v1964_v55, %v1916_v11 }
 0x4f9   : > { %v2016_v31 = vpack.c.bf16 %v1996_v7, %v1994_v38 }
 0x4fa   : > { %v1817_v58 = vpop.f32.mrf.mxu3  ;;  %v1866_v30 = vpop.f32.mrf.mxu2  ;;  %v1999_v19 = vmax.f32 %v1965_v18, 0.0 }
 0x4fb   : > { %2186 = vmatmul.bf16.gmra.mxu3 %v2016_v31  ;;  %v1818_v59 = vadd.f32 %v1817_v58, %v4032_v6 }
 0x4fd   : > { %v1917_v14 = vpop.f32.mrf.mxu0  ;;  %v1966_v15 = vpop.f32.mrf.mxu1  ;;  %v1867_v42 = vadd.f32 %v1866_v30, %v1818_v59 }
 0x4fe   : > { %v1918_v0 = vadd.f32 %v1917_v14, %v4037_v13 }
 0x4ff   : > { %v1998_v46 = vmax.f32 %v1867_v42, 0.0 }
 0x500   : > { %v1967_v9 = vadd.f32 %v1966_v15, %v1918_v0 }
 0x502   : > { %v2001_v25 = vmax.f32 %v1967_v9, 0.0  ;;  %v1819_v33 = vpop.f32.mrf.mxu3  ;;  %v1868_v21 = vpop.f32.mrf.mxu2 }
 0x503   : > { %v1820_v29 = vadd.f32 %v1819_v33, %v4032_v6 }
 0x504   : > { %v2019_v45 = vpack.c.bf16 %v2001_v25, %v1999_v19 }
 0x505   : > { %v1869_v37 = vadd.f32 %v1868_v21, %v1820_v29 }
 0x506   : > { %v1920_v44 = vpop.f32.mrf.mxu0  ;;  %v1969_v47 = vpop.f32.mrf.mxu1  ;;  %2909 = vmatmul.msk.bf16.gmra.mxu2 %vm1746_vm5, %v2019_v45 }
 0x507   : > { %v2000_v2 = vmax.f32 %v1869_v37, 0.0  ;;  %v1921_v48 = vadd.f32 %v1920_v44, %v4037_v13 }
 0x509   : > { %v2018_v17 = vpack.c.bf16 %v2000_v2, %v1998_v46  ;;  %v1970_v43 = vadd.f32 %v1969_v47, %v1921_v48 }
 0x50b   : > { %v1822_v23 = vpop.f32.mrf.mxu3  ;;  %v1871_v54 = vpop.f32.mrf.mxu2  ;;  %2191 = vmatmul.bf16.gmra.mxu3 %v2018_v17  ;;  %v2003_v40 = vmax.f32 %v1970_v43, 0.0 }
 0x50c   : > { %v1823_v60 = vadd.f32 %v1822_v23, %v4032_v6 }
 0x50e   : > { %v1922_v57 = vpop.f32.mrf.mxu0  ;;  %v1971_v41 = vpop.f32.mrf.mxu1  ;;  %v1872_v62 = vadd.f32 %v1871_v54, %v1823_v60 }
 0x50f   : > { %v1923_v61 = vadd.f32 %v1922_v57, %v4037_v13  ;;  %v4093_v13 = vld [vmem:[%s4269_s10 + $0x8] ss:$0 sm:$0xff] }
 0x510   : > { %v2002_v16 = vmax.f32 %v1872_v62, 0.0 }
 0x511   : > { %v1972_v56 = vadd.f32 %v1971_v41, %v1923_v61 }
 0x513   : > { %v2005_v28 = vmax.f32 %v1972_v56, 0.0  ;;  %v1824_v10 = vpop.f32.mrf.mxu3  ;;  %v1873_v35 = vpop.f32.mrf.mxu2 }
 0x514   : > { %v1825_v63 = vadd.f32 %v1824_v10, %v4032_v6 }
 0x515   : > { %v2021_v8 = vpack.c.bf16 %v2005_v28, %v2003_v40 }
 0x516   : > { %v1874_v32 = vadd.f32 %v1873_v35, %v1825_v63 }
 0x517   : > { %2910 = vmatmul.msk.bf16.gmra.mxu2 %vm1746_vm5, %v2021_v8 }
 0x518   : > { %v2004_v24 = vmax.f32 %v1874_v32, 0.0 }
 0x51a   : > { %v2020_v26 = vpack.c.bf16 %v2004_v24, %v2002_v16 }
 0x51b   : > { %v2162_v55 = vpop.f32.mrf.mxu3 }
 0x51c   : > { %2196 = vmatmul.bf16.gmra.mxu3 %v2020_v26  ;;  %v2163_v7 = vadd.f32 %v4093_v13, %v2162_v55 }
 0x51d   : > { %v2211_v38 = vpop.f32.mrf.mxu2 }
 0x51e   : > { %v2212_v6 = vadd.f32 %v2211_v38, %v2163_v7 }
 0x520   : > { %v2251_v14 = vmax.f32 %v2212_v6, 0.0 }
 0x523   : > { %v2164_v31 = vpop.f32.mrf.mxu3 }
 0x524   : > { %v2165_v11 = vadd.f32 %v4093_v13, %v2164_v31 }
 0x525   : > { %v2213_v58 = vpop.f32.mrf.mxu2 }
 0x526   : > { %v2214_v30 = vadd.f32 %v2213_v58, %v2165_v11 }
 0x528   : > { %v2252_v15 = vmax.f32 %v2214_v30, 0.0 }
 0x52a   : > { %v2267_v18 = vpack.c.bf16 %v2252_v15, %v2251_v14 }
 0x52b   : > { %v2167_v0 = vpop.f32.mrf.mxu3 }
 0x52c   : > { %2915 = vmatmul.msk.bf16.vlgmr.msrb.gmra.mxu0 %vm2286_vm8, %v2267_v18  ;;  %v2168_v9 = vadd.f32 %v4093_v13, %v2167_v0 }
 0x52d   : > { %v2216_v59 = vpop.f32.mrf.mxu2 }
 0x52e   : > { %v2217_v25 = vadd.f32 %v2216_v59, %v2168_v9 }
 0x530   : > { %v2253_v29 = vmax.f32 %v2217_v25, 0.0 }
 0x533   : > { %v2169_v19 = vpop.f32.mrf.mxu3 }
 0x534   : > { %v2170_v33 = vadd.f32 %v4093_v13, %v2169_v19 }
 0x535   : > { %v2218_v21 = vpop.f32.mrf.mxu2 }
 0x536   : > { %v2219_v42 = vadd.f32 %v2218_v21, %v2170_v33 }
 0x538   : > { %v2254_v45 = vmax.f32 %v2219_v42, 0.0 }
 0x53a   : > { %v2268_v37 = vpack.c.bf16 %v2254_v45, %v2253_v29 }
 0x53b   : > { %v2172_v44 = vpop.f32.mrf.mxu3 }
 0x53c   : > { %2916 = vmatmul.msk.bf16.gmra.mxu0 %vm2286_vm8, %v2268_v37  ;;  %v2173_v46 = vadd.f32 %v4093_v13, %v2172_v44 }
 0x53d   : > { %v2221_v47 = vpop.f32.mrf.mxu2 }
 0x53e   : > { %v2222_v17 = vadd.f32 %v2221_v47, %v2173_v46 }
 0x540   : > { %v2255_v57 = vmax.f32 %v2222_v17, 0.0 }
 0x543   : > { %v2174_v2 = vpop.f32.mrf.mxu3 }
 0x544   : > { %v2175_v48 = vadd.f32 %v4093_v13, %v2174_v2 }
 0x545   : > { %v2223_v23 = vpop.f32.mrf.mxu2 }
 0x546   : > { %v2224_v54 = vadd.f32 %v2223_v23, %v2175_v48 }
 0x548   : > { %v2256_v43 = vmax.f32 %v2224_v54, 0.0 }
 0x54a   : > { %v2269_v61 = vpack.c.bf16 %v2256_v43, %v2255_v57 }
 0x54b   : > { %v2177_v60 = vpop.f32.mrf.mxu3 }
 0x54c   : > { %2917 = vmatmul.msk.bf16.gmra.mxu0 %vm2286_vm8, %v2269_v61  ;;  %v2178_v56 = vadd.f32 %v4093_v13, %v2177_v60  ;;  %v4120_v60 = vld [vmem:[%s4269_s10 + $0x9] ss:$0 sm:$0xff] }
 0x54d   : > { %v2226_v41 = vpop.f32.mrf.mxu2 }
 0x54e   : > { %v2227_v28 = vadd.f32 %v2226_v41, %v2178_v56 }
 0x550   : > { %v2257_v8 = vmax.f32 %v2227_v28, 0.0 }
 0x553   : > { %v2179_v40 = vpop.f32.mrf.mxu3 }
 0x554   : > { %v2180_v10 = vadd.f32 %v4093_v13, %v2179_v40 }
 0x555   : > { %v2228_v62 = vpop.f32.mrf.mxu2 }
 0x556   : > { %v2229_v63 = vadd.f32 %v2228_v62, %v2180_v10 }
 0x558   : > { %v2258_v35 = vmax.f32 %v2229_v63, 0.0 }
 0x55a   : > { %v2270_v32 = vpack.c.bf16 %v2258_v35, %v2257_v8 }
 0x55c   : > { %2918 = vmatmul.msk.bf16.gmra.mxu0 %vm2286_vm8, %v2270_v32 }
 0x569   : > { %v2231_v16 = vpop.f32.mrf.mxu2 }
 0x56e   : > { %v2182_v24 = vpop.f32.mrf.mxu3 }
 0x56f   : > { %v2183_v55 = vadd.f32 %v4093_v13, %v2182_v24 }
 0x571   : > { %v2233_v26 = vpop.f32.mrf.mxu2  ;;  %v2232_v7 = vadd.f32 %v2231_v16, %v2183_v55 }
 0x573   : > { %v2259_v58 = vmax.f32 %v2232_v7, 0.0 }
 0x576   : > { %v2184_v38 = vpop.f32.mrf.mxu3 }
 0x577   : > { %v2185_v31 = vadd.f32 %v4093_v13, %v2184_v38 }
 0x579   : > { %v2234_v6 = vadd.f32 %v2233_v26, %v2185_v31  ;;  %v2236_v11 = vpop.f32.mrf.mxu2 }
 0x57b   : > { %v2260_v30 = vmax.f32 %v2234_v6, 0.0 }
 0x57d   : > { %v2271_v14 = vpack.c.bf16 %v2260_v30, %v2259_v58 }
 0x57e   : > { %v2187_v15 = vpop.f32.mrf.mxu3 }
 0x57f   : > { %2919 = vmatmul.msk.bf16.gmra.mxu0 %vm2286_vm8, %v2271_v14  ;;  %v2188_v0 = vadd.f32 %v4093_v13, %v2187_v15 }
 0x581   : > { %v2238_v18 = vpop.f32.mrf.mxu2  ;;  %v2237_v9 = vadd.f32 %v2236_v11, %v2188_v0  ;;  %v1288_v0 = vpop.xlane.xlu2 %1287 }
 0x582   : > { %3098 = vrcp.f32 %v1288_v0 }
 0x583   : > { %v2261_v33 = vmax.f32 %v2237_v9, 0.0  ;;  %v1294_v9 = vpop.xlane.xlu0 %1293 }
 0x586   : > { %v2189_v59 = vpop.f32.mrf.mxu3 }
 0x587   : > { %v2190_v19 = vadd.f32 %v4093_v13, %v2189_v59 }
 0x589   : > { %v2239_v25 = vadd.f32 %v2238_v18, %v2190_v19  ;;  %v2241_v42 = vpop.f32.mrf.mxu2  ;;  %v1291_v18 = vpop.xlane.xlu1 %1290 }
 0x58a   : > { %3100 = vrcp.f32 %v1291_v18 }
 0x58b   : > { %v2262_v21 = vmax.f32 %v2239_v25, 0.0 }
 0x58d   : > { %v2272_v29 = vpack.c.bf16 %v2262_v21, %v2261_v33  ;;  %v1297_v33 = vpop.xlane.xlu2 %1296  ;;  %v1303_v21 = vpop.xlane.xlu0 %1302 }
 0x58e   : > { %v2192_v45 = vpop.f32.mrf.mxu3 }
 0x58f   : > { %2920 = vmatmul.msk.bf16.gmra.mxu0 %vm2286_vm8, %v2272_v29  ;;  %v2193_v37 = vadd.f32 %v4093_v13, %v2192_v45 }
 0x591   : > { %v2243_v44 = vpop.f32.mrf.mxu2  ;;  %v2242_v46 = vadd.f32 %v2241_v42, %v2193_v37  ;;  %v1300_v59 = vpop.xlane.xlu1 %1299 }
 0x593   : > { %v2263_v48 = vmax.f32 %v2242_v46, 0.0 }
 0x595   : > { %v4146_v37 = vpop.xlane.xlu2 %1305  ;;  %v4149_v46 = vpop.xlane.xlu0 %1311 }
 0x596   : > { %v2194_v47 = vpop.f32.mrf.mxu3 }
 0x597   : > { %v2195_v2 = vadd.f32 %v4093_v13, %v2194_v47 }
 0x599   : > { %v2244_v17 = vadd.f32 %v2243_v44, %v2195_v2  ;;  %v4142_v29 = vpop.xlane.xlu1 %1308 }
 0x59a   : > { %v2246_v57 = vpop.f32.mrf.mxu2 }
 0x59b   : > { %v2264_v23 = vmax.f32 %v2244_v17, 0.0 }
 0x59d   : > { %v2273_v54 = vpack.c.bf16 %v2264_v23, %v2263_v48  ;;  %v4154_v48 = vpop.xlane.xlu2 %1314 }
 0x59f   : > { %v2197_v43 = vpop.f32.mrf.mxu3  ;;  %2921 = vmatmul.msk.bf16.gmra.mxu0 %vm2286_vm8, %v2273_v54  ;;  %v4158_v54 = vpop.xlane.xlu0 %1320 }
 0x5a0   : > { %v2198_v61 = vadd.f32 %v4093_v13, %v2197_v43 }
 0x5a1   : > { %v4151_v2 = vpop.xlane.xlu1 %1317 }
 0x5a2   : > { %v2247_v56 = vadd.f32 %v2246_v57, %v2198_v61  ;;  %v2248_v28 = vpop.f32.mrf.mxu2 }
 0x5a4   : > { %v2265_v8 = vmax.f32 %v2247_v56, 0.0 }
 0x5a5   : > { %v4163_v56 = vpop.xlane.xlu2 %1323 }
 0x5a7   : > { %v2199_v41 = vpop.f32.mrf.mxu3 }
 0x5a8   : > { %v2200_v40 = vadd.f32 %v4093_v13, %v2199_v41  ;;  %v3099_v41 = vpop.eup %3098 }
 0x5a9   : > { %v2324_v10 = vpop.f32.mrf.mxu0  ;;  %v4160_v57 = vpop.xlane.xlu1 %1326 }
 0x5aa   : > { %v2249_v62 = vadd.f32 %v2248_v28, %v2200_v40  ;;  %v2325_v63 = vadd.f32 %v4120_v60, %v2324_v10  ;;  %v4166_v28 = vpop.xlane.xlu0 %1329  ;;  %v1350_v10 = vmul.f32 %v3099_v41, %v3836_v5 }
 0x5ac   : > { %v2266_v35 = vmax.f32 %v2249_v62, 0.0  ;;  %2380 = vrot.lane.b32.xlu1 %v2325_v63, %s3171_s24 }
 0x5ae   : > { %v2274_v32 = vpack.c.bf16 %v2266_v35, %v2265_v8  ;;  %v3101_v35 = vpop.eup %3100 }
 0x5b0   : > { %2922 = vmatmul.msk.bf16.gmra.mxu0 %vm2286_vm8, %v2274_v32  ;;  %v4171_v32 = vpop.xlane.xlu2 %1332 }
 0x5b1   : > { %v2326_v16 = vpop.f32.mrf.mxu0 }
 0x5b2   : > { %v2327_v24 = vadd.f32 %v4120_v60, %v2326_v16 }
 0x5b4   : > { %2382 = vrot.lane.b32.xlu0 %v2327_v24, %s3171_s24  ;;  %v1351_v24 = vmul.f32 %v3101_v35, %v3857_v22 }
 0x5b9   : > { %v2329_v26 = vpop.f32.mrf.mxu0 }
 0x5ba   : > { %v2330_v13 = vadd.f32 %v4120_v60, %v2329_v26 }
 0x5bc   : > { %2384 = vrot.lane.b32.xlu2 %v2330_v13, %s3171_s24 }
 0x5c1   : > { %v2331_v55 = vpop.f32.mrf.mxu0 }
 0x5c2   : > { %v2332_v38 = vadd.f32 %v4120_v60, %v2331_v55 }
 0x5c4   : > { %2386 = vrot.lane.b32.xlu0 %v2332_v38, %s3171_s24 }
 0x5c9   : > { %v2334_v7 = vpop.f32.mrf.mxu0 }
 0x5ca   : > { %v2335_v31 = vadd.f32 %v4120_v60, %v2334_v7 }
 0x5cc   : > { %2388 = vrot.lane.b32.xlu1 %v2335_v31, %s3171_s24 }
 0x5d1   : > { %v2336_v6 = vpop.f32.mrf.mxu0 }
 0x5d2   : > { %v2337_v11 = vadd.f32 %v4120_v60, %v2336_v6 }
 0x5d4   : > { %2390 = vrot.lane.b32.xlu2 %v2337_v11, %s3171_s24 }
 0x5d9   : > { %v2339_v58 = vpop.f32.mrf.mxu0 }
 0x5da   : > { %v2340_v30 = vadd.f32 %v4120_v60, %v2339_v58 }
 0x5dc   : > { %2392 = vrot.lane.b32.xlu0 %v2340_v30, %s3171_s24 }
 0x5e1   : > { %v2341_v14 = vpop.f32.mrf.mxu0 }
 0x5e2   : > { %v2342_v15 = vadd.f32 %v4120_v60, %v2341_v14 }
 0x5e4   : > { %2394 = vrot.lane.b32.xlu1 %v2342_v15, %s3171_s24 }
 0x5fc   : > { %v2344_v19 = vpop.f32.mrf.mxu0 }
 0x5fd   : > { %v2345_v25 = vadd.f32 %v4120_v60, %v2344_v19 }
 0x5ff   : > { %2396 = vrot.lane.b32.xlu2 %v2345_v25, %s3171_s24 }
 0x604   : > { %v2346_v42 = vpop.f32.mrf.mxu0 }
 0x605   : > { %v2347_v45 = vadd.f32 %v4120_v60, %v2346_v42 }
 0x607   : > { %2398 = vrot.lane.b32.xlu0 %v2347_v45, %s3171_s24 }
 0x60c   : > { %v2349_v44 = vpop.f32.mrf.mxu0 }
 0x60d   : > { %v2350_v47 = vadd.f32 %v4120_v60, %v2349_v44 }
 0x60f   : > { %2400 = vrot.lane.b32.xlu1 %v2350_v47, %s3171_s24 }
 0x614   : > { %v2351_v17 = vpop.f32.mrf.mxu0 }
 0x615   : > { %v2352_v23 = vadd.f32 %v4120_v60, %v2351_v17 }
 0x616   : > { %v2385_v7 = vpop.permute.xlu2 %2384 }
 0x617   : > { %2402 = vrot.lane.b32.xlu2 %v2352_v23, %s3171_s24 }
 0x61c   : > { %v2354_v43 = vpop.f32.mrf.mxu0 }
 0x61d   : > { %v2355_v61 = vadd.f32 %v4120_v60, %v2354_v43 }
 0x61e   : > { %v2381_v40 = vpop.permute.xlu1 %2380 }
 0x61f   : > { %2404 = vrot.lane.b32.xlu0 %v2355_v61, %s3171_s24  ;;  %v2428_v62 = vmul.f32 %v2381_v40, %v1350_v10 }
 0x621   : > { %3102 = vtanh.f32 %v2428_v62 }
 0x622   : > { %3104 = vrcp.f32 %v1294_v9 }
 0x623   : > { %3106 = vrcp.f32 %v1297_v33 }
 0x624   : > { %v2356_v63 = vpop.f32.mrf.mxu0  ;;  %3108 = vrcp.f32 %v1303_v21 }
 0x625   : > { %v2357_v8 = vadd.f32 %v4120_v60, %v2356_v63 }
 0x626   : > { %v2383_v16 = vpop.permute.xlu0 %2382 }
 0x627   : > { %2406 = vrot.lane.b32.xlu1 %v2357_v8, %s3171_s24  ;;  %v2429_v26 = vmul.f32 %v2383_v16, %v1351_v24  ;;  %v3103_v55 = vpop.eup %3102 }
 0x628   : > { %v3105_v38 = vpop.eup %3104 }
 0x629   : > { %3110 = vtanh.f32 %v2429_v26  ;;  %v3107_v31 = vpop.eup %3106  ;;  %v1352_v6 = vmul.f32 %v3105_v38, %v3872_v49 }
 0x62a   : > { %3112 = vrcp.f32 %v1300_v59  ;;  %v1353_v58 = vmul.f32 %v3107_v31, %v3855_v50  ;;  %v3109_v30 = vpop.eup %3108 }
 0x62b   : > { %v2430_v11 = vmul.f32 %v2385_v7, %v1352_v6  ;;  %v1355_v49 = vmul.f32 %v3109_v30, %v3894_v39 }
 0x62d   : > { %v2359_v13 = vpop.f32.mrf.mxu0  ;;  %3114 = vtanh.f32 %v2430_v11 }
 0x62e   : > { %v2360_v5 = vadd.f32 %v4120_v60, %v2359_v13  ;;  %v2391_v9 = vpop.permute.xlu2 %2390 }
 0x62f   : > { %2476 = vrot.lane.b32.xlu1 %v3103_v55, %s3170_s20  ;;  %v3111_v18 = vpop.eup %3110  ;;  %v2433_v59 = vmul.f32 %v2391_v9, %v1355_v49 }
 0x630   : > { %2408 = vrot.lane.b32.xlu2 %v2360_v5, %s3171_s24  ;;  %v3113_v19 = vpop.eup %3112 }
 0x631   : > { %v1354_v25 = vmul.f32 %v3113_v19, %v3886_v27 }
 0x633   : > { %v3115_v50 = vpop.eup %3114 }
 0x635   : > { %v2361_v22 = vpop.f32.mrf.mxu0 }
 0x636   : > { %v2362_v14 = vadd.f32 %v4120_v60, %v2361_v22  ;;  %v2387_v15 = vpop.permute.xlu0 %2386 }
 0x637   : > { %v2431_v0 = vmul.f32 %v2387_v15, %v1353_v58 }
 0x638   : > { %2410 = vrot.lane.b32.xlu0 %v2362_v14, %s3171_s24  ;;  %2478 = vrot.lane.b32.xlu2 %v3111_v18, %s3170_s20 }
 0x639   : > { %3116 = vtanh.f32 %v2431_v0 }
 0x63a   : > { %3118 = vtanh.f32 %v2433_v59 }
 0x63e   : > { %v2389_v33 = vpop.permute.xlu1 %2388 }
 0x63f   : > { %v3117_v21 = vpop.eup %3116  ;;  %v2432_v60 = vmul.f32 %v2389_v33, %v1354_v25 }
 0x640   : > { %2480 = vrot.lane.b32.xlu0 %v3115_v50, %s3170_s20  ;;  %2482 = vrot.lane.b32.xlu1 %v3117_v21, %s3170_s20  ;;  %v3119_v42 = vpop.eup %3118 }
 0x641   : > { %3120 = vtanh.f32 %v2432_v60 }
 0x642   : > { %3122 = vrcp.f32 %v4146_v37 }
 0x643   : > { %3124 = vrcp.f32 %v4142_v29 }
 0x644   : > { %3126 = vrcp.f32 %v4149_v46 }
 0x647   : > { %v3121_v45 = vpop.eup %3120 }
 0x648   : > { %2486 = vrot.lane.b32.xlu0 %v3119_v42, %s3170_s20  ;;  %2484 = vrot.lane.b32.xlu2 %v3121_v45, %s3170_s20  ;;  %v3123_v39 = vpop.eup %3122 }
 0x649   : > { %v1356_v27 = vmul.f32 %v3123_v39, %v3869_v3  ;;  %v3125_v17 = vpop.eup %3124 }
 0x64a   : > { %v3127_v23 = vpop.eup %3126  ;;  %v1357_v37 = vmul.f32 %v3125_v17, %v3913_v51 }
 0x64b   : > { %v1358_v40 = vmul.f32 %v3127_v23, %v3918_v12 }
 0x64e   : > { %v2393_v44 = vpop.permute.xlu0 %2392 }
 0x64f   : > { %v2434_v47 = vmul.f32 %v2393_v44, %v1356_v27 }
 0x651   : > { %3128 = vtanh.f32 %v2434_v47 }
 0x656   : > { %v2395_v43 = vpop.permute.xlu1 %2394 }
 0x657   : > { %v3129_v61 = vpop.eup %3128  ;;  %v2435_v41 = vmul.f32 %v2395_v43, %v1357_v37 }
 0x658   : > { %2488 = vrot.lane.b32.xlu1 %v3129_v61, %s3170_s20 }
 0x659   : > { %3130 = vtanh.f32 %v2435_v41  ;;  %v2397_v29 = vpop.permute.xlu2 %2396 }
 0x65a   : > { %v2436_v10 = vmul.f32 %v2397_v29, %v1358_v40 }
 0x65c   : > { %3132 = vtanh.f32 %v2436_v10 }
 0x65d   : > { %3134 = vrcp.f32 %v4158_v54 }
 0x65e   : > { %3136 = vrcp.f32 %v4154_v48 }
 0x65f   : > { %v3131_v3 = vpop.eup %3130 }
 0x660   : > { %2490 = vrot.lane.b32.xlu2 %v3131_v3, %s3170_s20 }
 0x662   : > { %v3133_v46 = vpop.eup %3132 }
 0x663   : > { %2492 = vrot.lane.b32.xlu0 %v3133_v46, %s3170_s20  ;;  %v3135_v51 = vpop.eup %3134 }
 0x664   : > { %v1361_v62 = vmul.f32 %v3135_v51, %v3933_v36  ;;  %v3137_v12 = vpop.eup %3136 }
 0x665   : > { %v1359_v35 = vmul.f32 %v3137_v12, %v3890_v34 }
 0x671   : > { %v2403_v63 = vpop.permute.xlu2 %2402 }
 0x672   : > { %v2439_v8 = vmul.f32 %v2403_v63, %v1361_v62 }
 0x674   : > { %3138 = vtanh.f32 %v2439_v8 }
 0x675   : > { %3140 = vrcp.f32 %v4151_v2 }
 0x679   : > { %v2399_v16 = vpop.permute.xlu0 %2398 }
 0x67a   : > { %v3139_v24 = vpop.eup %3138  ;;  %v2437_v26 = vmul.f32 %v2399_v16, %v1359_v35 }
 0x67b   : > { %2498 = vrot.lane.b32.xlu0 %v3139_v24, %s3170_s20  ;;  %v3141_v54 = vpop.eup %3140 }
 0x67c   : > { %3142 = vtanh.f32 %v2437_v26  ;;  %v1360_v48 = vmul.f32 %v3141_v54, %v3928_v52 }
 0x67d   : > { %3144 = vrcp.f32 %v4166_v28 }
 0x681   : > { %v2401_v36 = vpop.permute.xlu1 %2400 }
 0x682   : > { %v3143_v13 = vpop.eup %3142  ;;  %v2438_v55 = vmul.f32 %v2401_v36, %v1360_v48 }
 0x683   : > { %2494 = vrot.lane.b32.xlu1 %v3143_v13, %s3170_s20  ;;  %v3145_v2 = vpop.eup %3144 }
 0x684   : > { %3146 = vtanh.f32 %v2438_v55  ;;  %v1364_v34 = vmul.f32 %v3145_v2, %v3952_v4 }
 0x685   : > { %3148 = vrcp.f32 %v4163_v56 }
 0x68a   : > { %v3147_v5 = vpop.eup %3146  ;;  %v2409_v38 = vpop.permute.xlu2 %2408 }
 0x68b   : > { %v2442_v7 = vmul.f32 %v2409_v38, %v1364_v34  ;;  %2496 = vrot.lane.b32.xlu2 %v3147_v5, %s3170_s20  ;;  %v3149_v28 = vpop.eup %3148 }
 0x68c   : > { %v1362_v52 = vmul.f32 %v3149_v28, %v3916_v53 }
 0x68d   : > { %3150 = vtanh.f32 %v2442_v7 }
 0x68e   : > { %3152 = vrcp.f32 %v4160_v57 }
 0x691   : > { %v2405_v56 = vpop.permute.xlu0 %2404 }
 0x692   : > { %v2479_v31 = vpop.permute.xlu2 %2478  ;;  %v2440_v4 = vmul.f32 %v2405_v56, %v1362_v52 }
 0x693   : > { %v3151_v6 = vpop.eup %3150  ;;  %2525 = vst.msk [vmem:[%s4214_s28 + $0x8] sm:$0xff] %vm1285_vm6, %v2479_v31 }
 0x694   : > { %3154 = vtanh.f32 %v2440_v4  ;;  %2504 = vrot.lane.b32.xlu0 %v3151_v6, %s3170_s20  ;;  %v3153_v57 = vpop.eup %3152 }
 0x695   : > { %v1363_v11 = vmul.f32 %v3153_v57, %v3950_v1 }
 0x699   : > { %v2407_v22 = vpop.permute.xlu1 %2406 }
 0x69a   : > { %v3155_v58 = vpop.eup %3154  ;;  %v2441_v30 = vmul.f32 %v2407_v22, %v1363_v11 }
 0x69b   : > { %2500 = vrot.lane.b32.xlu1 %v3155_v58, %s3170_s20 }
 0x69c   : > { %3156 = vtanh.f32 %v2441_v30 }
 0x69d   : > { %3158 = vrcp.f32 %v4171_v32 }
 0x6a1   : > { %v2477_v53 = vpop.permute.xlu1 %2476 }
 0x6a2   : > { %v3157_v14 = vpop.eup %3156  ;;  %2524 = vst.msk [vmem:[%s4214_s28] sm:$0xff] %vm1285_vm6, %v2477_v53  ;;  %v2485_v15 = vpop.permute.xlu2 %2484 }
 0x6a3   : > { %2528 = vst.msk [vmem:[%s4214_s28 + $0x20] sm:$0xff] %vm1285_vm6, %v2485_v15  ;;  %2502 = vrot.lane.b32.xlu2 %v3157_v14, %s3170_s20  ;;  %v3159_v1 = vpop.eup %3158 }
 0x6a4   : > { %v1365_v18 = vmul.f32 %v3159_v1, %v3931_v20 }
 0x6aa   : > { %v2411_v0 = vpop.permute.xlu0 %2410 }
 0x6ab   : > { %v2443_v9 = vmul.f32 %v2411_v0, %v1365_v18 }
 0x6ad   : > { %3160 = vtanh.f32 %v2443_v9 }
 0x6b2   : > { %v2483_v32 = vpop.permute.xlu1 %2482  ;;  %v2481_v19 = vpop.permute.xlu0 %2480 }
 0x6b3   : > { %v3161_v49 = vpop.eup %3160  ;;  %2527 = vst.msk [vmem:[%s4214_s28 + $0x18] sm:$0xff] %vm1285_vm6, %v2483_v32 }
 0x6b4   : > { %2526 = vst.msk [vmem:[%s4214_s28 + $0x10] sm:$0xff] %vm1285_vm6, %v2481_v19  ;;  %2506 = vrot.lane.b32.xlu1 %v3161_v49, %s3170_s20 }
 0x6ba   : > { %v2491_v59 = vpop.permute.xlu2 %2490  ;;  %v2487_v25 = vpop.permute.xlu0 %2486 }
 0x6bb   : > { %2531 = vst.msk [vmem:[%s4214_s28 + $0x38] sm:$0xff] %vm1285_vm6, %v2491_v59 }
 0x6bc   : > { %2529 = vst.msk [vmem:[%s4214_s28 + $0x28] sm:$0xff] %vm1285_vm6, %v2487_v25 }
 0x6ca   : > { %v2489_v20 = vpop.permute.xlu1 %2488 }
 0x6cb   : > { %2530 = vst.msk [vmem:[%s4214_s28 + $0x30] sm:$0xff] %vm1285_vm6, %v2489_v20 }
 0x6d5   : > { %v2493_v50 = vpop.permute.xlu0 %2492 }
 0x6d6   : > { %2532 = vst.msk [vmem:[%s4214_s28 + $0x40] sm:$0xff] %vm1285_vm6, %v2493_v50 }
 0x6e5   : > { %v2497_v33 = vpop.permute.xlu2 %2496 }
 0x6e6   : > { %2534 = vst.msk [vmem:[%s4214_s28 + $0x50] sm:$0xff] %vm1285_vm6, %v2497_v33 }
 0x6ed   : > { %v2499_v21 = vpop.permute.xlu0 %2498 }
 0x6ee   : > { %2535 = vst.msk [vmem:[%s4214_s28 + $0x58] sm:$0xff] %vm1285_vm6, %v2499_v21 }
 0x6f5   : > { %v2495_v60 = vpop.permute.xlu1 %2494 }
 0x6f6   : > { %2533 = vst.msk [vmem:[%s4214_s28 + $0x48] sm:$0xff] %vm1285_vm6, %v2495_v60 }
 0x6fd   : > { %v2503_v42 = vpop.permute.xlu2 %2502 }
 0x6fe   : > { %2537 = vst.msk [vmem:[%s4214_s28 + $0x68] sm:$0xff] %vm1285_vm6, %v2503_v42 }
 0x706   : > { %v2505_v45 = vpop.permute.xlu0 %2504 }
 0x707   : > { %2538 = vst.msk [vmem:[%s4214_s28 + $0x70] sm:$0xff] %vm1285_vm6, %v2505_v45 }
 0x70d   : > { %v2501_v39 = vpop.permute.xlu1 %2500 }
 0x70e   : > { %2536 = vst.msk [vmem:[%s4214_s28 + $0x60] sm:$0xff] %vm1285_vm6, %v2501_v39 }
 0x726   : > { %v2507_v27 = vpop.permute.xlu1 %2506 }
 0x727   : > { %2539 = vst.msk [vmem:[%s4214_s28 + $0x78] sm:$0xff] %vm1285_vm6, %v2507_v27 }
 0x728 PF: > { %s21_s17 = sadd.s32 1, %s3168_s17  }
 0x729   : > { %p18_p4 = scmp.ge.s32.totalorder %s21_s17, 4  }
 0x72b   :  { %20 = sbr.rel (!%p18_p4) target bundleno = 1 (0x1), region = 97 }

</bundles_post_ra>
